<compile_context>
chip_gen: v7x
topology: tpu7x:2x2x1
jax: 0.10.0
libtpu: 0.0.40
codegen_flags: <defaults>
</compile_context>

<pallas_src>
import functools

import jax
import jax.numpy as jnp
import numpy as np
from jax import lax
from jax.experimental import pallas as pl
from jax.experimental.pallas import tpu as pltpu


def _round_up(x, m):
    return ((x + m - 1) // m) * m


@functools.lru_cache(maxsize=1)
def _vmem_limit_bytes():
    """Generation-aware VMEM budget (v5e/v6e: 128 MiB physical, v7x: 64 MiB)."""
    try:
        cap = pltpu.get_tpu_info().vmem_capacity_bytes
    except Exception:  # non-TPU backend / interpret mode
        cap = 64 * 1024 * 1024
    return int(min(64 * 1024 * 1024, int(cap * 0.65)))


# ----------------------------------------------------------------------------
# Pallas kernels
# ----------------------------------------------------------------------------
def _conv3x3_kernel(x_ref, w_ref, b_ref, o_ref, *, activation, wp):
    """Fused 3x3 conv (+bias +activation) for one image and one Cout tile.

    x_ref: (1, (H+3)*(W+2), Cin)  f32   flattened, spatially zero-padded image
    w_ref: (3, 3, Cin, Co)        bf16
    b_ref: (1, Co)                f32
    o_ref: (1, H*(W+2), Co)       f32   (2 junk columns per row, sliced off outside)
    """
    _, rows_out, co = o_ref.shape
    acc = jnp.zeros((rows_out, co), jnp.float32)
    # On-chip im2col: 9 shifted contiguous row slices, each a (M, Cin)x(Cin, Co)
    # bf16 MXU matmul accumulated in f32.
    for kh in range(3):
        for kw in range(3):
            off = kh * wp + kw
            xs = x_ref[0, off:off + rows_out, :].astype(jnp.bfloat16)
            acc = acc + jnp.dot(xs, w_ref[kh, kw],
                                preferred_element_type=jnp.float32)
    acc = acc + b_ref[...]
    if activation == "relu":
        acc = jnp.maximum(acc, 0.0)
    elif activation == "sigmoid":
        acc = jax.nn.sigmoid(acc)
    o_ref[0] = acc.astype(o_ref.dtype)


def _gemm_bias_act_kernel(x_ref, w_ref, b_ref, o_ref, *, activation):
    """One (M-tile, N-tile) of act(x @ w + b).  bf16 MXU inputs, f32 accumulate."""
    acc = jnp.dot(x_ref[...].astype(jnp.bfloat16), w_ref[...],
                  preferred_element_type=jnp.float32)
    acc = acc + b_ref[...]
    if activation == "relu":
        acc = jnp.maximum(acc, 0.0)
    elif activation == "sigmoid":
        acc = jax.nn.sigmoid(acc)
    o_ref[...] = acc.astype(o_ref.dtype)


def _maxpool2x2_kernel(x_ref, o_ref):
    """x_ref: (tr, 2, W2, 2*C) -> o_ref: (tr, W2, C); max over each 2x2 window."""
    c = o_ref.shape[2]
    m = jnp.maximum(x_ref[:, 0, :, :], x_ref[:, 1, :, :])   # top/bottom rows
    o_ref[...] = jnp.maximum(m[:, :, :c], m[:, :, c:])      # left/right columns


# ----------------------------------------------------------------------------
# Layer wrappers
# ----------------------------------------------------------------------------
def conv3x3(x, layer, activation):
    """x: (N, H, W, Cin) f32 NHWC; layer = (w (3,3,Cin,Cout) bf16, b (1,Cout) f32)."""
    w, b = layer
    n, h, wdim, cin = x.shape
    assert w.shape[2] == cin, (w.shape, x.shape)
    cout = w.shape[3]
    tn = cout if cout <= 256 else 256          # lane-dense Cout tile (mult. of 128)
    wp = wdim + 2
    # +1 zero pad all around, +1 extra bottom row so every shifted flat row
    # slice inside the kernel stays in bounds.
    xpad = jnp.pad(x, ((0, 0), (1, 2), (1, 1), (0, 0)))
    rows_in = (h + 3) * wp
    rows_out = h * wp
    xf = xpad.reshape(n, rows_in, cin)         # contiguous -> free reshape

    out = pl.pallas_call(
        functools.partial(_conv3x3_kernel, activation=activation, wp=wp),
        out_shape=jax.ShapeDtypeStruct((n, rows_out, cout), jnp.float32),
        grid_spec=pltpu.PrefetchScalarGridSpec(
            num_scalar_prefetch=0,
            grid=(n, cout // tn),
            in_specs=[
                pl.BlockSpec((1, rows_in, cin), lambda i, j: (i, 0, 0)),
                pl.BlockSpec((3, 3, cin, tn), lambda i, j: (0, 0, 0, j)),
                pl.BlockSpec((1, tn), lambda i, j: (0, j)),
            ],
            out_specs=pl.BlockSpec((1, rows_out, tn), lambda i, j: (i, 0, j)),
        ),
        compiler_params=pltpu.CompilerParams(
            dimension_semantics=("parallel", "parallel"),
            vmem_limit_bytes=_vmem_limit_bytes(),
        ),
    )(xf, w, b)
    # Drop the 2 junk columns per output row introduced by the flat layout.
    return out.reshape(n, h, wp, cout)[:, :, :wdim, :]


def gemm_bias_act(x, w, b, activation="none", tm_cap=512, tn_cap=256):
    """x: (M, K) f32, w: (K, N) bf16, b: (1, N) f32 -> act(x @ w + b) in f32."""
    m, k = x.shape
    kw_, nc = w.shape
    assert k == kw_
    tm = min(tm_cap, _round_up(m, 8))
    tn = tn_cap if (nc > tn_cap and nc % tn_cap == 0) else nc
    return pl.pallas_call(
        functools.partial(_gemm_bias_act_kernel, activation=activation),
        out_shape=jax.ShapeDtypeStruct((m, nc), jnp.float32),
        grid_spec=pltpu.PrefetchScalarGridSpec(
            num_scalar_prefetch=0,
            grid=(pl.cdiv(m, tm), nc // tn),
            in_specs=[
                pl.BlockSpec((tm, k), lambda i, j: (i, 0)),
                pl.BlockSpec((k, tn), lambda i, j: (0, j)),
                pl.BlockSpec((1, tn), lambda i, j: (0, j)),
            ],
            out_specs=pl.BlockSpec((tm, tn), lambda i, j: (i, j)),
        ),
        compiler_params=pltpu.CompilerParams(
            dimension_semantics=("parallel", "parallel"),
            vmem_limit_bytes=_vmem_limit_bytes(),
        ),
    )(x, w, b)


def conv_transpose2x2(x, layer, activation):
    """x: (N,H,W,Cin); layer = (wmat (Cin, 4*Cout) bf16, cols (kh,kw,co); b (1,4*Cout))."""
    wmat, bmat = layer
    n, h, wdim, cin = x.shape
    cout = wmat.shape[1] // 4
    y = gemm_bias_act(x.reshape(n * h * wdim, cin), wmat, bmat, activation)
    y = y.reshape(n, h, wdim, 2, 2, cout).transpose(0, 1, 3, 2, 4, 5)
    return y.reshape(n, 2 * h, 2 * wdim, cout)


def maxpool_2x2(x):
    """x: (N, H, W, C) -> (N, H//2, W//2, C), 2x2 max pool, stride 2."""
    n, h, wdim, c = x.shape
    h2, w2 = h // 2, wdim // 2
    m = n * h2
    xv = x.reshape(m, 2, w2, 2 * c)            # contiguous -> free, no transpose
    tr = min(256, m)
    out = pl.pallas_call(
        _maxpool2x2_kernel,
        out_shape=jax.ShapeDtypeStruct((m, w2, c), x.dtype),
        grid_spec=pltpu.PrefetchScalarGridSpec(
            num_scalar_prefetch=0,
            grid=(pl.cdiv(m, tr),),
            in_specs=[pl.BlockSpec((tr, 2, w2, 2 * c), lambda i: (i, 0, 0, 0))],
            out_specs=pl.BlockSpec((tr, w2, c), lambda i: (i, 0, 0)),
        ),
        compiler_params=pltpu.CompilerParams(
            dimension_semantics=("parallel",),
            vmem_limit_bytes=_vmem_limit_bytes(),
        ),
    )(xv)
    return out.reshape(n, h2, w2, c)


# ----------------------------------------------------------------------------
# Parameters: raw (PyTorch layout) init + hoisted kernel-layout preparation
# ----------------------------------------------------------------------------
def init_raw_params(key, in_channels=1, out_channels=3):
    """Deterministic PyTorch-default-style float32 parameters (PyTorch layouts)."""
    def conv_p(k, cout, cin, ksz):
        k1, k2 = jax.random.split(k)
        bound = 1.0 / np.sqrt(cin * ksz * ksz)
        w = jax.random.uniform(k1, (cout, cin, ksz, ksz), jnp.float32, -bound, bound)
        b = jax.random.uniform(k2, (cout,), jnp.float32, -bound, bound)
        return w, b

    def convT_p(k, cin, cout, ksz):
        k1, k2 = jax.random.split(k)
        bound = 1.0 / np.sqrt(cout * ksz * ksz)
        w = jax.random.uniform(k1, (cin, cout, ksz, ksz), jnp.float32, -bound, bound)
        b = jax.random.uniform(k2, (cout,), jnp.float32, -bound, bound)
        return w, b

    ks = jax.random.split(key, 10)
    return {
        "enc1": conv_p(ks[0], 64, in_channels, 3),
        "enc2": conv_p(ks[1], 128, 64, 3),
        "enc3": conv_p(ks[2], 256, 128, 3),
        "enc4": conv_p(ks[3], 512, 256, 3),
        "up1": convT_p(ks[4], 512, 256, 2),
        "dec1": conv_p(ks[5], 256, 256, 3),
        "up2": convT_p(ks[6], 256, 128, 2),
        "dec2": conv_p(ks[7], 128, 128, 3),
        "dec3": conv_p(ks[8], 64, 128, 3),     # fixed: Conv2d(128 -> 64)
        "final": conv_p(ks[9], out_channels, 64, 3),
    }


def prepare_params(raw):
    """Hoisted weight relayout: kernel-friendly layouts, bf16 MXU weights, and
    zero-padding of all conv channel dims to multiples of 128 (lane-dense)."""
    def conv_prep(w, b):
        cout, cin = w.shape[0], w.shape[1]
        cin_p, cout_p = _round_up(cin, 128), _round_up(cout, 128)
        wk = jnp.transpose(w, (2, 3, 1, 0))                         # (3,3,Cin,Cout)
        wk = jnp.pad(wk, ((0, 0), (0, 0), (0, cin_p - cin), (0, cout_p - cout)))
        bp = jnp.pad(b, (0, cout_p - cout))
        return wk.astype(jnp.bfloat16), bp.reshape(1, cout_p).astype(jnp.float32)

    def convT_prep(w, b):
        cin, cout = w.shape[0], w.shape[1]
        wm = jnp.transpose(w, (0, 2, 3, 1)).reshape(cin, 4 * cout)  # cols (kh,kw,co)
        bm = jnp.tile(b, 4).reshape(1, 4 * cout)
        return wm.astype(jnp.bfloat16), bm.astype(jnp.float32)

    prep = {}
    for name in ("enc1", "enc2", "enc3", "enc4", "dec1", "dec2", "dec3", "final"):
        prep[name] = conv_prep(*raw[name])
    for name in ("up1", "up2"):
        prep[name] = convT_prep(*raw[name])
    return prep


# ----------------------------------------------------------------------------
# Full forward pass (NCHW in, NCHW out -- matches the PyTorch module)
# ----------------------------------------------------------------------------
@functools.partial(jax.jit, static_argnames=("out_channels",))
def image_super_res_forward(params, x_nchw, out_channels=3):
    x = jnp.transpose(x_nchw, (0, 2, 3, 1)).astype(jnp.float32)   # NCHW -> NHWC
    cin_pad = params["enc1"][0].shape[2]
    if cin_pad > x.shape[-1]:                                      # lane-pad input chans
        x = jnp.pad(x, ((0, 0), (0, 0), (0, 0), (0, cin_pad - x.shape[-1])))
    x = conv3x3(x, params["enc1"], "relu")
    x = maxpool_2x2(x)
    x = conv3x3(x, params["enc2"], "relu")
    x = maxpool_2x2(x)
    x = conv3x3(x, params["enc3"], "relu")
    x = conv3x3(x, params["enc4"], "relu")
    x = conv_transpose2x2(x, params["up1"], "relu")
    x = conv3x3(x, params["dec1"], "relu")
    x = conv_transpose2x2(x, params["up2"], "relu")
    x = conv3x3(x, params["dec2"], "relu")
    x = conv3x3(x, params["dec3"], "relu")
    x = conv3x3(x, params["final"], "sigmoid")
    x = x[..., :out_channels]                                      # drop lane padding
    return jnp.transpose(x, (0, 3, 1, 2))                          # NHWC -> NCHW


if __name__ == "__main__":
    key = jax.random.PRNGKey(0)
    pkey, xkey = jax.random.split(key)
    in_channels, out_channels = 1, 3
    raw = init_raw_params(pkey, in_channels, out_channels)
    params = prepare_params(raw)
    x = jax.random.uniform(xkey, (2, in_channels, 16, 16), dtype=jnp.float32)

    # Sanity check: fused Pallas conv (bf16 MXU, f32 accumulate) vs XLA conv on
    # bf16-rounded inputs/weights for the first layer.
    x_nhwc = jnp.transpose(x, (0, 2, 3, 1))
    cin_pad = params["enc1"][0].shape[2]
    x_in = jnp.pad(x_nhwc, ((0, 0), (0, 0), (0, 0), (0, cin_pad - in_channels)))
    y_pal = conv3x3(x_in, params["enc1"], "none")[..., :64]
    w_raw, b_raw = raw["enc1"]
    y_ref = lax.conv_general_dilated(
        x_nhwc.astype(jnp.bfloat16).astype(jnp.float32),
        jnp.transpose(w_raw, (2, 3, 1, 0)).astype(jnp.bfloat16).astype(jnp.float32),
        window_strides=(1, 1),
        padding=((1, 1), (1, 1)),
        dimension_numbers=("NHWC", "HWIO", "NHWC"),
    ) + b_raw
    np.testing.assert_allclose(np.asarray(y_pal), np.asarray(y_ref),
                               atol=2e-3, rtol=2e-3)

    out = jax.block_until_ready(
        image_super_res_forward(params, x, out_channels=out_channels))
    assert out.shape == (2, out_channels, 16, 16), out.shape
    assert bool(jnp.all(jnp.isfinite(out)))
    assert bool(jnp.all((out >= 0.0) & (out <= 1.0)))   # sigmoid range
    print("KERNEL_OK")
</pallas_src>

<mosaic_0001>
module attributes {stable_mosaic.version = 11 : i64} {
  func.func @_conv3x3_kernel(%arg0: i32, %arg1: i32, %arg2: memref<1x342x128xf32, #tpu.memory_space<vmem>>, %arg3: memref<3x3x128x128xbf16, #tpu.memory_space<vmem>>, %arg4: memref<1x128xf32, #tpu.memory_space<vmem>>, %arg5: memref<1x288x128xf32, #tpu.memory_space<vmem>>) attributes {dimension_semantics = [#tpu.dimension_semantics<parallel>, #tpu.dimension_semantics<parallel>], iteration_bounds = array<i64: 2, 1>, scalar_prefetch = 0 : i64, scratch_operands = 0 : i64, tpu.core_type = #tpu.core_type<tc>, window_params = [{transform_indices = @transform_0, window_bounds = array<i64: 1, 342, 128>}, {transform_indices = @transform_1, window_bounds = array<i64: 3, 3, 128, 128>}, {transform_indices = @transform_2, window_bounds = array<i64: 1, 128>}, {transform_indices = @transform_3, window_bounds = array<i64: 1, 288, 128>}]} {
    %cst = arith.constant 0.000000e+00 : f32
    %0 = vector.broadcast %cst : f32 to vector<288x128xf32>
    %c0 = arith.constant 0 : index
    %c0_0 = arith.constant 0 : index
    %c0_1 = arith.constant 0 : index
    %1 = vector.load %arg2[%c0, %c0_0, %c0_1] : memref<1x342x128xf32, #tpu.memory_space<vmem>>, vector<1x288x128xf32>
    %2 = vector.shape_cast %1 : vector<1x288x128xf32> to vector<288x128xf32>
    %3 = arith.truncf %2 : vector<288x128xf32> to vector<288x128xbf16>
    %c0_2 = arith.constant 0 : index
    %c0_3 = arith.constant 0 : index
    %c0_4 = arith.constant 0 : index
    %c0_5 = arith.constant 0 : index
    %4 = vector.load %arg3[%c0_2, %c0_3, %c0_4, %c0_5] : memref<3x3x128x128xbf16, #tpu.memory_space<vmem>>, vector<1x1x128x128xbf16>
    %5 = vector.shape_cast %4 : vector<1x1x128x128xbf16> to vector<128x128xbf16>
    %cst_6 = arith.constant dense<0.000000e+00> : vector<288x128xf32>
    %6 = tpu.matmul %3, %5, %cst_6 {dimension_numbers = #tpu.dot_dimension_numbers<[1], [0], [0], [1], [0, 0, 1, 1], [], []>} : vector<288x128xbf16>, vector<128x128xbf16>, vector<288x128xf32> -> vector<288x128xf32>
    %7 = arith.addf %0, %6 : vector<288x128xf32>
    %c0_7 = arith.constant 0 : index
    %c1 = arith.constant 1 : index
    %c0_8 = arith.constant 0 : index
    %8 = vector.load %arg2[%c0_7, %c1, %c0_8] : memref<1x342x128xf32, #tpu.memory_space<vmem>>, vector<1x288x128xf32>
    %9 = vector.shape_cast %8 : vector<1x288x128xf32> to vector<288x128xf32>
    %10 = arith.truncf %9 : vector<288x128xf32> to vector<288x128xbf16>
    %c0_9 = arith.constant 0 : index
    %c1_10 = arith.constant 1 : index
    %c0_11 = arith.constant 0 : index
    %c0_12 = arith.constant 0 : index
    %11 = vector.load %arg3[%c0_9, %c1_10, %c0_11, %c0_12] : memref<3x3x128x128xbf16, #tpu.memory_space<vmem>>, vector<1x1x128x128xbf16>
    %12 = vector.shape_cast %11 : vector<1x1x128x128xbf16> to vector<128x128xbf16>
    %cst_13 = arith.constant dense<0.000000e+00> : vector<288x128xf32>
    %13 = tpu.matmul %10, %12, %cst_13 {dimension_numbers = #tpu.dot_dimension_numbers<[1], [0], [0], [1], [0, 0, 1, 1], [], []>} : vector<288x128xbf16>, vector<128x128xbf16>, vector<288x128xf32> -> vector<288x128xf32>
    %14 = arith.addf %7, %13 : vector<288x128xf32>
    %c0_14 = arith.constant 0 : index
    %c2 = arith.constant 2 : index
    %c0_15 = arith.constant 0 : index
    %15 = vector.load %arg2[%c0_14, %c2, %c0_15] : memref<1x342x128xf32, #tpu.memory_space<vmem>>, vector<1x288x128xf32>
    %16 = vector.shape_cast %15 : vector<1x288x128xf32> to vector<288x128xf32>
    %17 = arith.truncf %16 : vector<288x128xf32> to vector<288x128xbf16>
    %c0_16 = arith.constant 0 : index
    %c2_17 = arith.constant 2 : index
    %c0_18 = arith.constant 0 : index
    %c0_19 = arith.constant 0 : index
    %18 = vector.load %arg3[%c0_16, %c2_17, %c0_18, %c0_19] : memref<3x3x128x128xbf16, #tpu.memory_space<vmem>>, vector<1x1x128x128xbf16>
    %19 = vector.shape_cast %18 : vector<1x1x128x128xbf16> to vector<128x128xbf16>
    %cst_20 = arith.constant dense<0.000000e+00> : vector<288x128xf32>
    %20 = tpu.matmul %17, %19, %cst_20 {dimension_numbers = #tpu.dot_dimension_numbers<[1], [0], [0], [1], [0, 0, 1, 1], [], []>} : vector<288x128xbf16>, vector<128x128xbf16>, vector<288x128xf32> -> vector<288x128xf32>
    %21 = arith.addf %14, %20 : vector<288x128xf32>
    %c0_21 = arith.constant 0 : index
    %c18 = arith.constant 18 : index
    %c0_22 = arith.constant 0 : index
    %22 = vector.load %arg2[%c0_21, %c18, %c0_22] : memref<1x342x128xf32, #tpu.memory_space<vmem>>, vector<1x288x128xf32>
    %23 = vector.shape_cast %22 : vector<1x288x128xf32> to vector<288x128xf32>
    %24 = arith.truncf %23 : vector<288x128xf32> to vector<288x128xbf16>
    %c1_23 = arith.constant 1 : index
    %c0_24 = arith.constant 0 : index
    %c0_25 = arith.constant 0 : index
    %c0_26 = arith.constant 0 : index
    %25 = vector.load %arg3[%c1_23, %c0_24, %c0_25, %c0_26] : memref<3x3x128x128xbf16, #tpu.memory_space<vmem>>, vector<1x1x128x128xbf16>
    %26 = vector.shape_cast %25 : vector<1x1x128x128xbf16> to vector<128x128xbf16>
    %cst_27 = arith.constant dense<0.000000e+00> : vector<288x128xf32>
    %27 = tpu.matmul %24, %26, %cst_27 {dimension_numbers = #tpu.dot_dimension_numbers<[1], [0], [0], [1], [0, 0, 1, 1], [], []>} : vector<288x128xbf16>, vector<128x128xbf16>, vector<288x128xf32> -> vector<288x128xf32>
    %28 = arith.addf %21, %27 : vector<288x128xf32>
    %c0_28 = arith.constant 0 : index
    %c19 = arith.constant 19 : index
    %c0_29 = arith.constant 0 : index
    %29 = vector.load %arg2[%c0_28, %c19, %c0_29] : memref<1x342x128xf32, #tpu.memory_space<vmem>>, vector<1x288x128xf32>
    %30 = vector.shape_cast %29 : vector<1x288x128xf32> to vector<288x128xf32>
    %31 = arith.truncf %30 : vector<288x128xf32> to vector<288x128xbf16>
    %c1_30 = arith.constant 1 : index
    %c1_31 = arith.constant 1 : index
    %c0_32 = arith.constant 0 : index
    %c0_33 = arith.constant 0 : index
    %32 = vector.load %arg3[%c1_30, %c1_31, %c0_32, %c0_33] : memref<3x3x128x128xbf16, #tpu.memory_space<vmem>>, vector<1x1x128x128xbf16>
    %33 = vector.shape_cast %32 : vector<1x1x128x128xbf16> to vector<128x128xbf16>
    %cst_34 = arith.constant dense<0.000000e+00> : vector<288x128xf32>
    %34 = tpu.matmul %31, %33, %cst_34 {dimension_numbers = #tpu.dot_dimension_numbers<[1], [0], [0], [1], [0, 0, 1, 1], [], []>} : vector<288x128xbf16>, vector<128x128xbf16>, vector<288x128xf32> -> vector<288x128xf32>
    %35 = arith.addf %28, %34 : vector<288x128xf32>
    %c0_35 = arith.constant 0 : index
    %c20 = arith.constant 20 : index
    %c0_36 = arith.constant 0 : index
    %36 = vector.load %arg2[%c0_35, %c20, %c0_36] : memref<1x342x128xf32, #tpu.memory_space<vmem>>, vector<1x288x128xf32>
    %37 = vector.shape_cast %36 : vector<1x288x128xf32> to vector<288x128xf32>
    %38 = arith.truncf %37 : vector<288x128xf32> to vector<288x128xbf16>
    %c1_37 = arith.constant 1 : index
    %c2_38 = arith.constant 2 : index
    %c0_39 = arith.constant 0 : index
    %c0_40 = arith.constant 0 : index
    %39 = vector.load %arg3[%c1_37, %c2_38, %c0_39, %c0_40] : memref<3x3x128x128xbf16, #tpu.memory_space<vmem>>, vector<1x1x128x128xbf16>
    %40 = vector.shape_cast %39 : vector<1x1x128x128xbf16> to vector<128x128xbf16>
    %cst_41 = arith.constant dense<0.000000e+00> : vector<288x128xf32>
    %41 = tpu.matmul %38, %40, %cst_41 {dimension_numbers = #tpu.dot_dimension_numbers<[1], [0], [0], [1], [0, 0, 1, 1], [], []>} : vector<288x128xbf16>, vector<128x128xbf16>, vector<288x128xf32> -> vector<288x128xf32>
    %42 = arith.addf %35, %41 : vector<288x128xf32>
    %c0_42 = arith.constant 0 : index
    %c36 = arith.constant 36 : index
    %c0_43 = arith.constant 0 : index
    %43 = vector.load %arg2[%c0_42, %c36, %c0_43] : memref<1x342x128xf32, #tpu.memory_space<vmem>>, vector<1x288x128xf32>
    %44 = vector.shape_cast %43 : vector<1x288x128xf32> to vector<288x128xf32>
    %45 = arith.truncf %44 : vector<288x128xf32> to vector<288x128xbf16>
    %c2_44 = arith.constant 2 : index
    %c0_45 = arith.constant 0 : index
    %c0_46 = arith.constant 0 : index
    %c0_47 = arith.constant 0 : index
    %46 = vector.load %arg3[%c2_44, %c0_45, %c0_46, %c0_47] : memref<3x3x128x128xbf16, #tpu.memory_space<vmem>>, vector<1x1x128x128xbf16>
    %47 = vector.shape_cast %46 : vector<1x1x128x128xbf16> to vector<128x128xbf16>
    %cst_48 = arith.constant dense<0.000000e+00> : vector<288x128xf32>
    %48 = tpu.matmul %45, %47, %cst_48 {dimension_numbers = #tpu.dot_dimension_numbers<[1], [0], [0], [1], [0, 0, 1, 1], [], []>} : vector<288x128xbf16>, vector<128x128xbf16>, vector<288x128xf32> -> vector<288x128xf32>
    %49 = arith.addf %42, %48 : vector<288x128xf32>
    %c0_49 = arith.constant 0 : index
    %c37 = arith.constant 37 : index
    %c0_50 = arith.constant 0 : index
    %50 = vector.load %arg2[%c0_49, %c37, %c0_50] : memref<1x342x128xf32, #tpu.memory_space<vmem>>, vector<1x288x128xf32>
    %51 = vector.shape_cast %50 : vector<1x288x128xf32> to vector<288x128xf32>
    %52 = arith.truncf %51 : vector<288x128xf32> to vector<288x128xbf16>
    %c2_51 = arith.constant 2 : index
    %c1_52 = arith.constant 1 : index
    %c0_53 = arith.constant 0 : index
    %c0_54 = arith.constant 0 : index
    %53 = vector.load %arg3[%c2_51, %c1_52, %c0_53, %c0_54] : memref<3x3x128x128xbf16, #tpu.memory_space<vmem>>, vector<1x1x128x128xbf16>
    %54 = vector.shape_cast %53 : vector<1x1x128x128xbf16> to vector<128x128xbf16>
    %cst_55 = arith.constant dense<0.000000e+00> : vector<288x128xf32>
    %55 = tpu.matmul %52, %54, %cst_55 {dimension_numbers = #tpu.dot_dimension_numbers<[1], [0], [0], [1], [0, 0, 1, 1], [], []>} : vector<288x128xbf16>, vector<128x128xbf16>, vector<288x128xf32> -> vector<288x128xf32>
    %56 = arith.addf %49, %55 : vector<288x128xf32>
    %c0_56 = arith.constant 0 : index
    %c38 = arith.constant 38 : index
    %c0_57 = arith.constant 0 : index
    %57 = vector.load %arg2[%c0_56, %c38, %c0_57] : memref<1x342x128xf32, #tpu.memory_space<vmem>>, vector<1x288x128xf32>
    %58 = vector.shape_cast %57 : vector<1x288x128xf32> to vector<288x128xf32>
    %59 = arith.truncf %58 : vector<288x128xf32> to vector<288x128xbf16>
    %c2_58 = arith.constant 2 : index
    %c2_59 = arith.constant 2 : index
    %c0_60 = arith.constant 0 : index
    %c0_61 = arith.constant 0 : index
    %60 = vector.load %arg3[%c2_58, %c2_59, %c0_60, %c0_61] : memref<3x3x128x128xbf16, #tpu.memory_space<vmem>>, vector<1x1x128x128xbf16>
    %61 = vector.shape_cast %60 : vector<1x1x128x128xbf16> to vector<128x128xbf16>
    %cst_62 = arith.constant dense<0.000000e+00> : vector<288x128xf32>
    %62 = tpu.matmul %59, %61, %cst_62 {dimension_numbers = #tpu.dot_dimension_numbers<[1], [0], [0], [1], [0, 0, 1, 1], [], []>} : vector<288x128xbf16>, vector<128x128xbf16>, vector<288x128xf32> -> vector<288x128xf32>
    %63 = arith.addf %56, %62 : vector<288x128xf32>
    %c0_63 = arith.constant 0 : index
    %c0_64 = arith.constant 0 : index
    %64 = vector.load %arg4[%c0_63, %c0_64] : memref<1x128xf32, #tpu.memory_space<vmem>>, vector<1x128xf32>
    %65 = vector.broadcast %64 : vector<1x128xf32> to vector<288x128xf32>
    %66 = arith.addf %63, %65 : vector<288x128xf32>
    %c0_65 = arith.constant 0 : index
    %c0_66 = arith.constant 0 : index
    %c0_67 = arith.constant 0 : index
    %67 = vector.load %arg5[%c0_65, %c0_66, %c0_67] : memref<1x288x128xf32, #tpu.memory_space<vmem>>, vector<1x288x128xf32>
    %68 = vector.shape_cast %67 : vector<1x288x128xf32> to vector<288x128xf32>
    %69 = vector.shape_cast %66 : vector<288x128xf32> to vector<1x288x128xf32>
    tpu.vector_store %arg5[%c0_65, %c0_66, %c0_67], %69 {strides = array<i32>} : memref<1x288x128xf32, #tpu.memory_space<vmem>>, vector<1x288x128xf32>,
    return
  }
  func.func @transform_0(%arg0: i32, %arg1: i32) -> (i32, i32, i32) {
    %c0_i32 = arith.constant 0 : i32
    %c0_i32_0 = arith.constant 0 : i32
    %c0_i32_1 = arith.constant 0 : i32
    return %arg0, %c0_i32, %c0_i32_0 : i32, i32, i32
  }
  func.func @transform_1(%arg0: i32, %arg1: i32) -> (i32, i32, i32, i32) {
    %c0_i32 = arith.constant 0 : i32
    %c0_i32_0 = arith.constant 0 : i32
    %c0_i32_1 = arith.constant 0 : i32
    %c0_i32_2 = arith.constant 0 : i32
    return %c0_i32, %c0_i32_0, %c0_i32_1, %arg1 : i32, i32, i32, i32
  }
  func.func @transform_2(%arg0: i32, %arg1: i32) -> (i32, i32) {
    %c0_i32 = arith.constant 0 : i32
    %c0_i32_0 = arith.constant 0 : i32
    return %c0_i32, %arg1 : i32, i32
  }
  func.func @transform_3(%arg0: i32, %arg1: i32) -> (i32, i32, i32) {
    %c0_i32 = arith.constant 0 : i32
    %c0_i32_0 = arith.constant 0 : i32
    return %arg0, %c0_i32, %arg1 : i32, i32, i32
  }
}

</mosaic_0001>

<bundles_post_ra>
// kernel: tpu_custom_call.1
= control target key start
LH: loop header
LB: loop body
LE: loop exit
PB: predicated region body
PF: predicated region fallthrough
CT: control target
= control target key end

     0   :  { %8 = vsyncpa [#allocation3], 0  ;;  %s5637_s0 = inlined_call_operand.vmem [shape: f32[2,342,128], index: 0, kind: input, shape index: {}]   ;;  %s5638_s1 = inlined_call_operand.vmem [shape: bf16[3,3,128,128], index: 1, kind: input, shape index: {}]   ;;  %s5639_s2 = inlined_call_operand.vmem [shape: f32[1,128], index: 2, kind: input, shape index: {}]   ;;  %s5640_s3 = inlined_call_operand.hbm [shape: f32[2,288,128], index: 3, kind: output, shape index: {}]  }
   0x1   :  { %10 = vsyncpa [#allocation3 + $0x1], 0  ;;  %s4784_s12 = smov 0   ;;  %s4786_s13 = smov 0  }
   0x2   :  { %s4788_s14 = smov 0   ;;  %s4790_s15 = smov 0  }
   0x3   :  { %s4792_s16 = smov 0   ;;  %s4794_s17 = smov 0  }
   0x4 LB: > { %s3323_s18 = sadd.s32 4294967295, %s4759_s17   ;;  %s3324_s19 = sadd.s32 4294967294, %s4759_s17   ;;  %s4759_s17 = sphi %s4794_s17, %s16_s17   ;;  %s4755_s16 = sphi %s4792_s16, %s5647_s16   ;;  %s4751_s15 = sphi %s4790_s15, %s5646_s15   ;;  %s4747_s14 = sphi %s4788_s14, %s5645_s14   ;;  %s4743_s13 = sphi %s4786_s13, %s5644_s13   ;;  %s4739_s12 = sphi %s4784_s12, %s5643_s12  }
   0x5   : > { %s28_s20 = sadd.s32 1, %s4755_s16  ;;  %s115_s21 = sadd.s32 1, %s4747_s14 }
   0x6   : > { %p30_p0 = scmp.ge.s32.totalorder %s28_s20, 2  ;;  %p125_p1 = scmp.ne.s32.totalorder %s4747_s14, %s4743_s13 }
   0x7   : > { %p126_p2 = scmp.eq.s32.totalorder %s3323_s18, 1  ;;  %p131_p3 = scmp.ne.s32.totalorder %s4743_s13, %s4739_s12 }
   0x8   : > { %s5649_s20 = smov (%p30_p0, %s28_s20), 0  ;;  %p132_p5 = scmp.eq.s32.totalorder %s3324_s19, 1 }
   0x9   : > { %p4824_p4 = por %p126_p2, %p125_p1  ;;  %s110_s23 = ssub.s32 %s4755_s16, %s5649_s20 }
   0xa   : > { %p3329_p6 = scmp.ge.s32.totalorder %s4759_s17, 1  ;;  %p113_p7 = scmp.eq.s32.totalorder %s110_s23, 0 }
   0xb   : > { %p4831_p8 = por %p132_p5, %p131_p3  ;;  %p171_p9 = scmp.lt.s32.totalorder %s4759_s17, 3 }
   0xc   : > { %s4837_s25 = scalar_select %p113_p7, %s4747_s14, %s115_s21  }
   0xd   : > { %p172_p10 = pnand %p3329_p6, %p171_p9 }
   0xe   : > { %v4601_v0 = vld [vmem:[%s5638_s1 + $0x40] sm:$0xff] (!%p172_p10)   ;;  %p202_p11 = scmp.lt.s32.totalorder (!%p172_p10), %s4751_s15, 1  ;;  %v4603_v2 = vld [vmem:[%s5638_s1 + $0x48] sm:$0xff] (!%p172_p10)   ;;  %v4605_v4 = vld [vmem:[%s5638_s1 + $0x50] sm:$0xff] (!%p172_p10)   ;;  %s4543_s7 = smul.u32 (!%p172_p10), 4608, %s4751_s15 }
   0xf   : > { %175 = sbr.rel (%p172_p10) target bundleno = 601 (0x259), region = 32  ;;  %v4602_v1 = vld [vmem:[%s5638_s1 + $0x100] sm:$0xff] (!%p172_p10)   ;;  %3769 = vmatprep.subr.bf16.mxu1 (!%p172_p10), %v4601_v0  ;;  %v4604_v3 = vld [vmem:[%s5638_s1 + $0x108] sm:$0xff] (!%p172_p10)   ;;  %v4606_v5 = vld [vmem:[%s5638_s1 + $0x110] sm:$0xff] (!%p172_p10)   ;;  %s4761_s19 = smov (!%p172_p10), [#allocation2]  }
  0x10   : > { %3977 = vmatprep.subr.bf16.mxu0 (!%p172_p10), %v4602_v1  ;;  %3770 = vmatpush3.bf16.msra.mxu1 (!%p172_p10), %v4601_v0  ;;  %v4607_v6 = vld [vmem:[%s5638_s1 + $0x58] sm:$0xff] (!%p172_p10)   ;;  %v4609_v8 = vld [vmem:[%s5638_s1 + $0x60] sm:$0xff] (!%p172_p10)   ;;  %v4611_v10 = vld [vmem:[%s5638_s1 + $0x68] sm:$0xff] (!%p172_p10)   ;;  %s4685_s21 = sshll.u32 (!%p172_p10), %s4761_s19, 4  ;;  %s4686_s21 = int_to_ptr.vmem [resolvable:$false] %s4685_s21 }
  0x11   : > { %3978 = vmatpush3.bf16.msra.mxu0 (!%p172_p10), %v4602_v1  ;;  %3771 = vmatprep.subr.bf16.mxu1 (!%p172_p10), %v4603_v2  ;;  %v4608_v7 = vld [vmem:[%s5638_s1 + $0x118] sm:$0xff] (!%p172_p10)   ;;  %v4610_v9 = vld [vmem:[%s5638_s1 + $0x120] sm:$0xff] (!%p172_p10)   ;;  %v4612_v14 = vld [vmem:[%s5638_s1 + $0x128] sm:$0xff] (!%p172_p10)   ;;  %s4687_s23 = scalar_lea.vmem (!%p172_p10), %s4686_s21, 9216 }
  0x12   : > { %3979 = vmatprep.subr.bf16.mxu0 (!%p172_p10), %v4604_v3  ;;  %v4613_v18 = vld [vmem:[%s5638_s1 + $0x70] sm:$0xff] (!%p172_p10)   ;;  %v4615_v20 = vld [vmem:[%s5638_s1 + $0x78] sm:$0xff] (!%p172_p10)   ;;  %v4617_v24 = vld [vmem:[%s5638_s1] sm:$0xff] (!%p172_p10)  }
  0x13   : > { %v4614_v19 = vld [vmem:[%s5638_s1 + $0x130] sm:$0xff] (!%p172_p10)   ;;  %v4616_v21 = vld [vmem:[%s5638_s1 + $0x138] sm:$0xff] (!%p172_p10)   ;;  %v4618_v27 = vld [vmem:[%s5638_s1 + $0x140] sm:$0xff] (!%p172_p10)  }
  0x14   : > { %3772 = vmatpush3.bf16.msra.mxu1 (!%p172_p10), %v4603_v2  ;;  %v4619_v35 = vld [vmem:[%s5638_s1 + $0x148] sm:$0xff] (!%p172_p10)   ;;  %v4620_v43 = vld [vmem:[%s5638_s1 + $0x150] sm:$0xff] (!%p172_p10)   ;;  %v4622_v52 = vld [vmem:[%s5638_s1 + $0x158] sm:$0xff] (!%p172_p10)  }
  0x15   : > { %3980 = vmatpush3.bf16.msra.mxu0 (!%p172_p10), %v4604_v3  ;;  %3773 = vmatprep.subr.bf16.mxu1 (!%p172_p10), %v4605_v4  ;;  %v4621_v41 = vld [vmem:[%s5638_s1 + $0x8] sm:$0xff] (!%p172_p10)   ;;  %v4624_v46 = vld [vmem:[%s5638_s1 + $0x10] sm:$0xff] (!%p172_p10)   ;;  %v4627_v55 = vld [vmem:[%s5638_s1 + $0x18] sm:$0xff] (!%p172_p10)  }
  0x16   : > { %s203_s11 = scalar_select %p202_p11, %s4751_s15, 1  ;;  %3981 = vmatprep.subr.bf16.mxu0 %v4606_v5  ;;  %v4623_v58 = vld [vmem:[%s5638_s1 + $0x160] sm:$0xff]  }
  0x17   : > { %v4629_v0 = vld [vmem:[%s5638_s1 + $0x20] sm:$0xff]   ;;  %s5581_s15 = scalar_lea.hbm %s5640_s3, %s4543_s7 }
  0x18   : > { %s4542_s26 = smul.u32 344, %s203_s11  ;;  %3774 = vmatpush3.bf16.msra.mxu1 %v4605_v4  ;;  %v4625_v4 = vld [vmem:[%s5638_s1 + $0x168] sm:$0xff]  }
  0x19   : > { %3982 = vmatpush3.bf16.msra.mxu0 %v4606_v5  ;;  %3775 = vmatprep.subr.bf16.mxu1 %v4607_v6 }
  0x1a   : > { %3983 = vmatprep.subr.bf16.mxu0 %v4608_v7  ;;  %s4874_s6 = scalar_lea.vmem %s5637_s0, %s4542_s26 }
  0x1b   : > { %v285_v11 = vld [vmem:[%s4874_s6 + $0x1] sm:$0xff]  ;;  %v286_v12 = vld [vmem:[%s4874_s6 + $0x9] sm:$0xff]  ;;  %v1470_v13 = vld [vmem:[%s4874_s6 + $0x13] sm:$0xff] }
  0x1c   : > { %3776 = vmatpush3.bf16.msra.mxu1 %v4607_v6  ;;  %v321_v15 = vpack.c.bf16 %v286_v12, %v285_v11  ;;  %v1471_v16 = vld [vmem:[%s4874_s6 + $0x1b] sm:$0xff]  ;;  %v287_v22 = vld [vmem:[%s4874_s6 + $0x11] sm:$0xff]  ;;  %v1472_v25 = vld [vmem:[%s4874_s6 + $0x23] sm:$0xff] }
  0x1d   : > { %3984 = vmatpush3.bf16.msra.mxu0 %v4608_v7  ;;  %3777 = vmatprep.subr.bf16.mxu1 %v4609_v8  ;;  %v1506_v17 = vpack.c.bf16 %v1471_v16, %v1470_v13  ;;  %v288_v23 = vld [vmem:[%s4874_s6 + $0x19] sm:$0xff]  ;;  %v1473_v26 = vld [vmem:[%s4874_s6 + $0x2b] sm:$0xff]  ;;  %v289_v28 = vld [vmem:[%s4874_s6 + $0x21] sm:$0xff] }
  0x1e   : > { %3985 = vmatprep.subr.bf16.mxu0 %v4610_v9  ;;  %3785 = vmatprep.mubr.bf16.mxu1 %v321_v15  ;;  %v290_v29 = vld [vmem:[%s4874_s6 + $0x29] sm:$0xff]  ;;  %v1474_v30 = vld [vmem:[%s4874_s6 + $0x33] sm:$0xff]  ;;  %v322_v31 = vpack.c.bf16 %v288_v23, %v287_v22  ;;  %v1475_v32 = vld [vmem:[%s4874_s6 + $0x3b] sm:$0xff]  ;;  %v1507_v33 = vpack.c.bf16 %v1473_v26, %v1472_v25 }
  0x1f   : > { %3993 = vmatprep.mubr.bf16.mxu0 %v1506_v17  ;;  %v323_v34 = vpack.c.bf16 %v290_v29, %v289_v28  ;;  %v1508_v36 = vpack.c.bf16 %v1475_v32, %v1474_v30  ;;  %v291_v37 = vld [vmem:[%s4874_s6 + $0x31] sm:$0xff]  ;;  %v292_v38 = vld [vmem:[%s4874_s6 + $0x39] sm:$0xff]  ;;  %v1476_v39 = vld [vmem:[%s4874_s6 + $0x43] sm:$0xff] }
  0x20   : > { %3778 = vmatpush3.bf16.msra.mxu1 %v4609_v8  ;;  %v1477_v40 = vld [vmem:[%s4874_s6 + $0x4b] sm:$0xff]  ;;  %v293_v42 = vld [vmem:[%s4874_s6 + $0x41] sm:$0xff]  ;;  %v1478_v45 = vld [vmem:[%s4874_s6 + $0x53] sm:$0xff]  ;;  %v324_v48 = vpack.c.bf16 %v292_v38, %v291_v37 }
  0x21   : > { %3986 = vmatpush3.bf16.msra.mxu0 %v4610_v9  ;;  %3779 = vmatprep.subr.bf16.mxu1 %v4611_v10  ;;  %v294_v44 = vld [vmem:[%s4874_s6 + $0x49] sm:$0xff]  ;;  %v1479_v47 = vld [vmem:[%s4874_s6 + $0x5b] sm:$0xff]  ;;  %v1509_v49 = vpack.c.bf16 %v1477_v40, %v1476_v39  ;;  %v295_v53 = vld [vmem:[%s4874_s6 + $0x51] sm:$0xff] }
  0x22   : > { %3987 = vmatprep.subr.bf16.mxu0 %v4612_v14  ;;  %v325_v50 = vpack.c.bf16 %v294_v44, %v293_v42  ;;  %v1510_v51 = vpack.c.bf16 %v1479_v47, %v1478_v45  ;;  %v296_v54 = vld [vmem:[%s4874_s6 + $0x59] sm:$0xff]  ;;  %v1480_v56 = vld [vmem:[%s4874_s6 + $0x63] sm:$0xff]  ;;  %v1481_v57 = vld [vmem:[%s4874_s6 + $0x6b] sm:$0xff] }
  0x23   : > { %v297_v59 = vld [vmem:[%s4874_s6 + $0x61] sm:$0xff]  ;;  %v298_v60 = vld [vmem:[%s4874_s6 + $0x69] sm:$0xff]  ;;  %v1482_v61 = vld [vmem:[%s4874_s6 + $0x73] sm:$0xff]  ;;  %v326_v63 = vpack.c.bf16 %v296_v54, %v295_v53  ;;  %v1511_v1 = vpack.c.bf16 %v1481_v57, %v1480_v56 }
  0x24   : > { %3780 = vmatpush3.bf16.msra.mxu1 %v4611_v10  ;;  %v1483_v62 = vld [vmem:[%s4874_s6 + $0x7b] sm:$0xff]  ;;  %v327_v2 = vpack.c.bf16 %v298_v60, %v297_v59  ;;  %v299_v5 = vld [vmem:[%s4874_s6 + $0x71] sm:$0xff]  ;;  %v4631_v6 = vld [vmem:[%s5638_s1 + $0x28] sm:$0xff]  }
  0x25   : > { %3988 = vmatpush3.bf16.msra.mxu0 %v4612_v14  ;;  %3781 = vmatprep.subr.bf16.mxu1 %v4613_v18  ;;  %v1512_v3 = vpack.c.bf16 %v1483_v62, %v1482_v61  ;;  %v300_v7 = vld [vmem:[%s4874_s6 + $0x79] sm:$0xff]  ;;  %v1484_v8 = vld [vmem:[%s4874_s6 + $0x83] sm:$0xff]  ;;  %v1485_v9 = vld [vmem:[%s4874_s6 + $0x8b] sm:$0xff] }
  0x26   : > { %3989 = vmatprep.subr.bf16.mxu0 %v4614_v19  ;;  %v301_v10 = vld [vmem:[%s4874_s6 + $0x81] sm:$0xff]  ;;  %v302_v11 = vld [vmem:[%s4874_s6 + $0x89] sm:$0xff]  ;;  %v1802_v13 = vld [vmem:[%s4874_s6 + $0x14] sm:$0xff]  ;;  %v328_v15 = vpack.c.bf16 %v300_v7, %v299_v5  ;;  %v1513_v17 = vpack.c.bf16 %v1485_v9, %v1484_v8 }
  0x27   : > { %v4626_v12 = vld [vmem:[%s5638_s1 + $0x170] sm:$0xff]   ;;  %v1803_v14 = vld [vmem:[%s4874_s6 + $0x1c] sm:$0xff]  ;;  %v4632_v37 = vld [vmem:[%s5638_s1 + $0x188] sm:$0xff]  }
  0x28   : > { %3782 = vmatpush3.bf16.msra.mxu1 %v4613_v18  ;;  %v4633_v16 = vld [vmem:[%s5638_s1 + $0x30] sm:$0xff]   ;;  %v329_v18 = vpack.c.bf16 %v302_v11, %v301_v10  ;;  %v304_v22 = vld [vmem:[%s4874_s6 + $0x99] sm:$0xff]  ;;  %v305_v26 = vld [vmem:[%s4874_s6 + $0xa1] sm:$0xff] }
  0x29   : > { %3990 = vmatpush3.bf16.msra.mxu0 %v4614_v19  ;;  %3783 = vmatprep.subr.bf16.mxu1 %v4615_v20  ;;  %v1838_v19 = vpack.c.bf16 %v1803_v14, %v1802_v13  ;;  %v4635_v23 = vld [vmem:[%s5638_s1 + $0x38] sm:$0xff]   ;;  %v1805_v25 = vld [vmem:[%s4874_s6 + $0x2c] sm:$0xff]  ;;  %v4630_v30 = vld [vmem:[%s5638_s1 + $0x180] sm:$0xff]  }
  0x2a   : > { %3991 = vmatprep.subr.bf16.mxu0 %v4616_v21  ;;  %v1806_v28 = vld [vmem:[%s4874_s6 + $0x34] sm:$0xff]  ;;  %v1807_v29 = vld [vmem:[%s4874_s6 + $0x3c] sm:$0xff]  ;;  %v1808_v39 = vld [vmem:[%s4874_s6 + $0x44] sm:$0xff] }
  0x2b   : > { %v4992_v32 = vld [vmem:[%s5638_s1 + $0x80] sm:$0xff]   ;;  %v1809_v40 = vld [vmem:[%s4874_s6 + $0x4c] sm:$0xff]  ;;  %v1814_v57 = vld [vmem:[%s4874_s6 + $0x74] sm:$0xff] }
  0x2c   : > { %3784 = vmatpush3.bf16.msra.mxu1 %v4615_v20  ;;  %v4628_v20 = vld [vmem:[%s5638_s1 + $0x178] sm:$0xff]   ;;  %v310_v42 = vld [vmem:[%s4874_s6 + $0xc9] sm:$0xff]  ;;  %v5015_v47 = vpack.c.bf16 %v1809_v40, %v1808_v39  ;;  %v4638_v59 = vld [vmem:[%s5638_s1 + $0x1a0] sm:$0xff]  }
  0x2d   : > { %3992 = vmatpush3.bf16.msra.mxu0 %v4616_v21  ;;  %3821 = vmatprep.subr.bf16.mxu1 %v4617_v24  ;;  %v303_v21 = vld [vmem:[%s4874_s6 + $0x91] sm:$0xff]  ;;  %v308_v38 = vld [vmem:[%s4874_s6 + $0xb9] sm:$0xff]  ;;  %v1812_v53 = vld [vmem:[%s4874_s6 + $0x64] sm:$0xff] }
  0x2e   : > { %4029 = vmatprep.subr.bf16.mxu0 %v4618_v27  ;;  %v1811_v44 = vld [vmem:[%s4874_s6 + $0x5c] sm:$0xff]  ;;  %v4634_v45 = vld [vmem:[%s5638_s1 + $0x190] sm:$0xff]  }
  0x2f   : > { %3786 = vmatmul.mubr.bf16.vlgmr.msra.gmra.mrb[0].mxu1 %v322_v31  ;;  %v330_v31 = vpack.c.bf16 %v304_v22, %v303_v21  ;;  %v1813_v54 = vld [vmem:[%s4874_s6 + $0x6c] sm:$0xff]  ;;  %v317_v5 = vld [vmem:[%s4874_s6 + $0x101] sm:$0xff]  ;;  %v1818_v7 = vld [vmem:[%s4874_s6 + $0x94] sm:$0xff] }
  0x30   : > { %3994 = vmatmul.mubr.bf16.vlgmr.msra.gmra.mrb[0].mxu0 %v1507_v33  ;;  %3822 = vmatpush3.bf16.msra.mxu1 %v4617_v24  ;;  %v1804_v24 = vld [vmem:[%s4874_s6 + $0x24] sm:$0xff]  ;;  %v5035_v61 = vpack.c.bf16 %v1813_v54, %v1812_v53  ;;  %v1819_v8 = vld [vmem:[%s4874_s6 + $0x9c] sm:$0xff]  ;;  %v4642_v9 = vld [vmem:[%s5638_s1 + $0x1b0] sm:$0xff]  }
  0x31   : > { %4030 = vmatpush3.bf16.msra.mxu0 %v4618_v27  ;;  %3789 = vmatprep.mubr.bf16.mxu1 %v323_v34  ;;  %v306_v27 = vld [vmem:[%s4874_s6 + $0xa9] sm:$0xff]  ;;  %v4994_v33 = vpack.c.bf16 %v1805_v25, %v1804_v24  ;;  %v5057_v13 = vpack.c.bf16 %v1819_v8, %v1818_v7  ;;  %v319_v14 = vld [vmem:[%s4874_s6 + $0x111] sm:$0xff]  ;;  %v1823_v22 = vld [vmem:[%s4874_s6 + $0xbc] sm:$0xff] }
  0x32   : > { %4031 = vmatprep.subr.bf16.mxu0 %v4619_v35  ;;  %3997 = vmatprep.mubr.bf16.mxu0 %v1508_v36  ;;  %v331_v34 = vpack.c.bf16 %v306_v27, %v305_v26  ;;  %v307_v36 = vld [vmem:[%s4874_s6 + $0xb1] sm:$0xff]  ;;  %v314_v56 = vld [vmem:[%s4874_s6 + $0xe9] sm:$0xff]  ;;  %v1831_v54 = vld [vmem:[%s4874_s6 + $0xfc] sm:$0xff] }
  0x33   : > { %3823 = vmatprep.subr.bf16.mxu1 %v4621_v41  ;;  %v1822_v21 = vld [vmem:[%s4874_s6 + $0xb4] sm:$0xff] }
  0x34   : > { %3824 = vmatpush3.bf16.msra.mxu1 %v4621_v41  ;;  %v309_v41 = vld [vmem:[%s4874_s6 + $0xc1] sm:$0xff]  ;;  %v5079_v27 = vpack.c.bf16 %v1823_v22, %v1822_v21  ;;  %v1830_v53 = vld [vmem:[%s4874_s6 + $0xf4] sm:$0xff] }
  0x35   : > { %4032 = vmatpush3.bf16.msra.mxu0 %v4619_v35  ;;  %3825 = vmatprep.subr.bf16.mxu1 %v4624_v46  ;;  %v4996_v35 = vpack.c.bf16 %v1807_v29, %v1806_v28  ;;  %v217_v28 = vld [vmem:[%s4874_s6 + $0x10] sm:$0xff]  ;;  %v218_v29 = vld [vmem:[%s4874_s6 + $0x18] sm:$0xff] }
  0x36   : > { %4033 = vmatprep.subr.bf16.mxu0 %v4620_v43  ;;  %v252_v39 = vpack.c.bf16 %v218_v29, %v217_v28  ;;  %v234_v28 = vld [vmem:[%s4874_s6 + $0x98] sm:$0xff]  ;;  %v235_v29 = vld [vmem:[%s4874_s6 + $0xa0] sm:$0xff] }
  0x37   : > { %3790 = vmatmul.mubr.bf16.gmra.mrb[4].mxu1 %v324_v48  ;;  %v333_v48 = vpack.c.bf16 %v310_v42, %v309_v41 }
  0x38   : > { %3998 = vmatmul.mubr.bf16.gmra.mrb[4].mxu0 %v1509_v49  ;;  %3793 = vmatprep.mubr.bf16.mxu1 %v325_v50  ;;  %v4636_v50 = vld [vmem:[%s5638_s1 + $0x198] sm:$0xff]  }
  0x39   : > { %4034 = vmatpush3.bf16.msra.mxu0 %v4620_v43  ;;  %4001 = vmatprep.mubr.bf16.mxu0 %v1510_v51  ;;  %v1810_v43 = vld [vmem:[%s4874_s6 + $0x54] sm:$0xff] }
  0x3a   : > { %4035 = vmatprep.subr.bf16.mxu0 %v4622_v52  ;;  %3826 = vmatpush3.bf16.msra.mxu1 %v4624_v46  ;;  %v332_v46 = vpack.c.bf16 %v308_v38, %v307_v36  ;;  %v5017_v49 = vpack.c.bf16 %v1811_v44, %v1810_v43  ;;  %v311_v51 = vld [vmem:[%s4874_s6 + $0xd1] sm:$0xff]  ;;  %v220_v36 = vld [vmem:[%s4874_s6 + $0x28] sm:$0xff]  ;;  %v1827_v38 = vld [vmem:[%s4874_s6 + $0xdc] sm:$0xff] }
  0x3b   : > { %3827 = vmatprep.subr.bf16.mxu1 %v4627_v55  ;;  %v4639_v43 = vld [vmem:[%s5638_s1 + $0x88] sm:$0xff]   ;;  %v221_v44 = vld [vmem:[%s4874_s6 + $0x30] sm:$0xff] }
  0x3d   : > { %4036 = vmatpush3.bf16.msra.mxu0 %v4622_v52  ;;  %v312_v52 = vld [vmem:[%s4874_s6 + $0xd9] sm:$0xff] }
  0x3e   : > { %4037 = vmatprep.subr.bf16.mxu0 %v4623_v58  ;;  %3828 = vmatpush3.bf16.msra.mxu1 %v4627_v55  ;;  %v313_v55 = vld [vmem:[%s4874_s6 + $0xe1] sm:$0xff]  ;;  %v334_v60 = vpack.c.bf16 %v312_v52, %v311_v51  ;;  %v4641_v52 = vld [vmem:[%s5638_s1 + $0x90] sm:$0xff]  }
  0x3f   : > { %3794 = vmatmul.mubr.bf16.gmra.mrb[8].mxu1 %v326_v63  ;;  %3829 = vmatprep.subr.bf16.mxu1 %v4629_v0  ;;  %v335_v62 = vpack.c.bf16 %v314_v56, %v313_v55  ;;  %v224_v51 = vld [vmem:[%s4874_s6 + $0x48] sm:$0xff] }
  0x40   : > { %4002 = vmatmul.mubr.bf16.gmra.mrb[8].mxu0 %v1511_v1  ;;  %3797 = vmatprep.mubr.bf16.mxu1 %v327_v2  ;;  %v316_v1 = vld [vmem:[%s4874_s6 + $0xf9] sm:$0xff]  ;;  %v4640_v2 = vld [vmem:[%s5638_s1 + $0x1a8] sm:$0xff]  }
  0x41   : > { %4038 = vmatpush3.bf16.msra.mxu0 %v4623_v58  ;;  %4005 = vmatprep.mubr.bf16.mxu0 %v1512_v3  ;;  %v1815_v58 = vld [vmem:[%s4874_s6 + $0x7c] sm:$0xff]  ;;  %v1816_v3 = vld [vmem:[%s4874_s6 + $0x84] sm:$0xff] }
  0x42   : > { %4039 = vmatprep.subr.bf16.mxu0 %v4625_v4  ;;  %3830 = vmatpush3.bf16.msra.mxu1 %v4629_v0  ;;  %v5037_v63 = vpack.c.bf16 %v1815_v58, %v1814_v57  ;;  %v315_v0 = vld [vmem:[%s4874_s6 + $0xf1] sm:$0xff]  ;;  %v5115_v57 = vpack.c.bf16 %v1831_v54, %v1830_v53  ;;  %v247_v54 = vld [vmem:[%s4874_s6 + $0x100] sm:$0xff] }
  0x43   : > { %3831 = vmatprep.subr.bf16.mxu1 %v4631_v6  ;;  %v336_v10 = vpack.c.bf16 %v316_v1, %v315_v0  ;;  %v4643_v58 = vld [vmem:[%s5638_s1 + $0x98] sm:$0xff]   ;;  %v1833_v0 = vld [vmem:[%s4874_s6 + $0x10c] sm:$0xff]  ;;  %v227_v1 = vld [vmem:[%s4874_s6 + $0x60] sm:$0xff] }
  0x44   : > { %v246_v53 = vld [vmem:[%s4874_s6 + $0xf8] sm:$0xff] }
  0x45   : > { %4040 = vmatpush3.bf16.msra.mxu0 %v4625_v4  ;;  %v1817_v4 = vld [vmem:[%s4874_s6 + $0x8c] sm:$0xff] }
  0x46   : > { %4041 = vmatprep.subr.bf16.mxu0 %v4626_v12  ;;  %3832 = vmatpush3.bf16.msra.mxu1 %v4631_v6  ;;  %v318_v6 = vld [vmem:[%s4874_s6 + $0x109] sm:$0xff]  ;;  %v5055_v11 = vpack.c.bf16 %v1817_v4, %v1816_v3  ;;  %v1834_v3 = vld [vmem:[%s4874_s6 + $0x114] sm:$0xff]  ;;  %v1835_v4 = vld [vmem:[%s4874_s6 + $0x11c] sm:$0xff] }
  0x47   : > { %3798 = vmatmul.mubr.bf16.gmra.mrb[12].mxu1 %v328_v15  ;;  %3833 = vmatprep.subr.bf16.mxu1 %v4633_v16  ;;  %v4644_v15 = vld [vmem:[%s5638_s1 + $0x1b8] sm:$0xff]  }
  0x48   : > { %4006 = vmatmul.mubr.bf16.gmra.mrb[12].mxu0 %v1513_v17  ;;  %3801 = vmatprep.mubr.bf16.mxu1 %v329_v18  ;;  %v1820_v17 = vld [vmem:[%s4874_s6 + $0xa4] sm:$0xff]  ;;  %v1821_v18 = vld [vmem:[%s4874_s6 + $0xac] sm:$0xff] }
  0x49   : > { %4042 = vmatpush3.bf16.msra.mxu0 %v4626_v12  ;;  %4045 = vmatprep.mubr.bf16.mxu0 %v1838_v19  ;;  %v337_v12 = vpack.c.bf16 %v318_v6, %v317_v5  ;;  %v215_v19 = vld [vmem:[%s4874_s6] sm:$0xff]  ;;  %v5077_v25 = vpack.c.bf16 %v1821_v18, %v1820_v17  ;;  %v232_v18 = vld [vmem:[%s4874_s6 + $0x88] sm:$0xff] }
  0x4a   : > { %4043 = vmatprep.subr.bf16.mxu0 %v4628_v20  ;;  %3834 = vmatpush3.bf16.msra.mxu1 %v4633_v16  ;;  %v320_v16 = vld [vmem:[%s4874_s6 + $0x119] sm:$0xff] }
  0x4b   : > { %3835 = vmatprep.subr.bf16.mxu1 %v4635_v23  ;;  %v338_v24 = vpack.c.bf16 %v320_v16, %v319_v14  ;;  %v4645_v5 = vld [vmem:[%s5638_s1 + $0xa0] sm:$0xff]   ;;  %v230_v14 = vld [vmem:[%s4874_s6 + $0x78] sm:$0xff]  ;;  %v1837_v16 = vld [vmem:[%s4874_s6 + $0x12c] sm:$0xff] }
  0x4c   : > { %v231_v17 = vld [vmem:[%s4874_s6 + $0x80] sm:$0xff] }
  0x4d   : > { %4044 = vmatpush3.bf16.msra.mxu0 %v4628_v20  ;;  %v216_v20 = vld [vmem:[%s4874_s6 + $0x8] sm:$0xff]  ;;  %v259_v22 = vpack.c.bf16 %v232_v18, %v231_v17  ;;  %v4659_v17 = vld [vmem:[%s5638_s1 + $0xd8] sm:$0xff]  }
  0x4e   : > { %4081 = vmatprep.subr.bf16.mxu0 %v4630_v30  ;;  %3836 = vmatpush3.bf16.msra.mxu1 %v4635_v23  ;;  %v5075_v23 = vld [vmem:[%s5638_s1 + $0x1c0] sm:$0xff]   ;;  %v251_v26 = vpack.c.bf16 %v216_v20, %v215_v19  ;;  %v4649_v19 = vld [vmem:[%s5638_s1 + $0xb0] sm:$0xff]  }
  0x4f   : > { %3802 = vmatmul.mubr.bf16.gmra.mrb[16].mxu1 %v330_v31  ;;  %3873 = vmatprep.subr.bf16.mxu1 %v4992_v32  ;;  %v1825_v31 = vld [vmem:[%s4874_s6 + $0xcc] sm:$0xff]  ;;  %v817_v18 = vld [vmem:[%s4874_s6 + $0x5a] sm:$0xff] }
  0x50   : > { %4046 = vmatmul.mubr.bf16.vlgmr.msra.gmra.mrb[0].mxu0 %v4994_v33  ;;  %3805 = vmatprep.mubr.bf16.mxu1 %v331_v34  ;;  %v219_v34 = vld [vmem:[%s4874_s6 + $0x20] sm:$0xff] }
  0x51   : > { %4049 = vmatprep.mubr.bf16.mxu0 %v4996_v35  ;;  %4082 = vmatpush3.bf16.msra.mxu0 %v4630_v30  ;;  %v1824_v30 = vld [vmem:[%s4874_s6 + $0xc4] sm:$0xff]  ;;  %v253_v41 = vpack.c.bf16 %v220_v36, %v219_v34 }
  0x52   : > { %4083 = vmatprep.subr.bf16.mxu0 %v4632_v37  ;;  %v5092_v40 = vpack.c.bf16 %v1825_v31, %v1824_v30  ;;  %v236_v30 = vld [vmem:[%s4874_s6 + $0xa8] sm:$0xff]  ;;  %v5165_v31 = vld [vmem:[%s5638_s1 + $0xc0] sm:$0xff]  }
  0x53   : > { %v261_v36 = vpack.c.bf16 %v236_v30, %v235_v29  ;;  %v2168_v29 = vld [vmem:[%s4874_s6 + $0x134] sm:$0xff]  ;;  %v2169_v30 = vld [vmem:[%s4874_s6 + $0x13c] sm:$0xff] }
  0x55   : > { %4084 = vmatpush3.bf16.msra.mxu0 %v4632_v37  ;;  %v1826_v37 = vld [vmem:[%s4874_s6 + $0xd4] sm:$0xff] }
  0x56   : > { %4085 = vmatprep.subr.bf16.mxu0 %v4634_v45  ;;  %v5094_v42 = vpack.c.bf16 %v1827_v38, %v1826_v37  ;;  %v4648_v37 = vld [vmem:[%s5638_s1 + $0x1c8] sm:$0xff]   ;;  %v238_v38 = vld [vmem:[%s4874_s6 + $0xb8] sm:$0xff] }
  0x57   : > { %3806 = vmatmul.mubr.bf16.gmra.mrb[20].mxu1 %v332_v46  ;;  %v1828_v46 = vld [vmem:[%s4874_s6 + $0xe4] sm:$0xff] }
  0x58   : > { %4050 = vmatmul.mubr.bf16.gmra.mrb[4].mxu0 %v5015_v47  ;;  %3809 = vmatprep.mubr.bf16.mxu1 %v333_v48  ;;  %v1829_v48 = vld [vmem:[%s4874_s6 + $0xec] sm:$0xff] }
  0x59   : > { %4053 = vmatprep.mubr.bf16.mxu0 %v5017_v49  ;;  %4086 = vmatpush3.bf16.msra.mxu0 %v4634_v45  ;;  %v222_v45 = vld [vmem:[%s4874_s6 + $0x38] sm:$0xff]  ;;  %v5113_v55 = vpack.c.bf16 %v1829_v48, %v1828_v46  ;;  %v243_v46 = vld [vmem:[%s4874_s6 + $0xe0] sm:$0xff]  ;;  %v244_v48 = vld [vmem:[%s4874_s6 + $0xe8] sm:$0xff] }
  0x5a   : > { %4087 = vmatprep.subr.bf16.mxu0 %v4636_v50 }
  0x5d   : > { %4088 = vmatpush3.bf16.msra.mxu0 %v4636_v50  ;;  %v223_v50 = vld [vmem:[%s4874_s6 + $0x40] sm:$0xff] }
  0x5e   : > { %4089 = vmatprep.subr.bf16.mxu0 %v4638_v59  ;;  %v255_v56 = vpack.c.bf16 %v224_v51, %v223_v50  ;;  %v4654_v50 = vld [vmem:[%s5638_s1 + $0x1e0] sm:$0xff]  }
  0x5f   : > { %3810 = vmatmul.mubr.bf16.gmra.mrb[24].mxu1 %v334_v60  ;;  %v226_v60 = vld [vmem:[%s4874_s6 + $0x58] sm:$0xff] }
  0x60   : > { %4054 = vmatmul.mubr.bf16.gmra.mrb[8].mxu0 %v5035_v61  ;;  %3813 = vmatprep.mubr.bf16.mxu1 %v335_v62  ;;  %v1832_v62 = vld [vmem:[%s4874_s6 + $0x104] sm:$0xff] }
  0x61   : > { %4057 = vmatprep.mubr.bf16.mxu0 %v5037_v63  ;;  %4090 = vmatpush3.bf16.msra.mxu0 %v4638_v59  ;;  %v225_v59 = vld [vmem:[%s4874_s6 + $0x50] sm:$0xff]  ;;  %v5133_v7 = vpack.c.bf16 %v1833_v0, %v1832_v62  ;;  %v806_v62 = vld [vmem:[%s4874_s6 + $0x2] sm:$0xff] }
  0x62   : > { %4091 = vmatprep.subr.bf16.mxu0 %v4640_v2  ;;  %v256_v6 = vpack.c.bf16 %v226_v60, %v225_v59  ;;  %v250_v60 = vld [vmem:[%s4874_s6 + $0x118] sm:$0xff]  ;;  %v807_v0 = vld [vmem:[%s4874_s6 + $0xa] sm:$0xff] }
  0x65   : > { %4092 = vmatpush3.bf16.msra.mxu0 %v4640_v2  ;;  %v228_v2 = vld [vmem:[%s4874_s6 + $0x68] sm:$0xff] }
  0x66   : > { %4093 = vmatprep.subr.bf16.mxu0 %v4642_v9  ;;  %v257_v8 = vpack.c.bf16 %v228_v2, %v227_v1  ;;  %v5217_v1 = vld [vmem:[%s5638_s1 + $0x200] sm:$0xff]  }
  0x67   : > { %3814 = vmatmul.mubr.bf16.gmra.mrb[28].mxu1 %v336_v10  ;;  %v4647_v10 = vld [vmem:[%s5638_s1 + $0xa8] sm:$0xff]  }
  0x68   : > { %4058 = vmatmul.mubr.bf16.gmra.mrb[12].mxu0 %v5055_v11  ;;  %3817 = vmatprep.mubr.bf16.mxu1 %v337_v12  ;;  %v229_v12 = vld [vmem:[%s4874_s6 + $0x70] sm:$0xff] }
  0x69   : > { %4061 = vmatprep.mubr.bf16.mxu0 %v5057_v13  ;;  %4094 = vmatpush3.bf16.msra.mxu0 %v4642_v9  ;;  %v5135_v9 = vpack.c.bf16 %v1835_v4, %v1834_v3  ;;  %v258_v20 = vpack.c.bf16 %v230_v14, %v229_v12  ;;  %v809_v3 = vld [vmem:[%s4874_s6 + $0x1a] sm:$0xff]  ;;  %v810_v4 = vld [vmem:[%s4874_s6 + $0x22] sm:$0xff]  ;;  %v815_v14 = vld [vmem:[%s4874_s6 + $0x4a] sm:$0xff] }
  0x6a   : > { %4095 = vmatprep.subr.bf16.mxu0 %v4644_v15  ;;  %v813_v12 = vld [vmem:[%s4874_s6 + $0x3a] sm:$0xff] }
  0x6d   : > { %4096 = vmatpush3.bf16.msra.mxu0 %v4644_v15  ;;  %v1836_v15 = vld [vmem:[%s4874_s6 + $0x124] sm:$0xff] }
  0x6e   : > { %4133 = vmatprep.subr.bf16.mxu0 %v5075_v23  ;;  %v5151_v21 = vpack.c.bf16 %v1837_v16, %v1836_v15  ;;  %v4657_v15 = vld [vmem:[%s5638_s1 + $0xd0] sm:$0xff]  }
  0x6f   : > { %3818 = vmatmul.mubr.bf16.gmra.mrb[32].mxu1 %v338_v24  ;;  %v4651_v24 = vld [vmem:[%s5638_s1 + $0xb8] sm:$0xff]  }
  0x70   : > { %4062 = vmatmul.mubr.bf16.gmra.mrb[16].mxu0 %v5077_v25  ;;  %3837 = vmatprep.mubr.bf16.mxu1 %v251_v26  ;;  %v233_v26 = vld [vmem:[%s4874_s6 + $0x90] sm:$0xff] }
  0x71   : > { %4065 = vmatprep.mubr.bf16.mxu0 %v5079_v27  ;;  %v260_v34 = vpack.c.bf16 %v234_v28, %v233_v26  ;;  %v820_v26 = vld [vmem:[%s4874_s6 + $0x72] sm:$0xff]  ;;  %v821_v28 = vld [vmem:[%s4874_s6 + $0x7a] sm:$0xff] }
  0x77   : > { %3838 = vmatmul.mubr.bf16.vlgmr.msra.gmra.mrb[0].mxu1 %v252_v39  ;;  %v239_v39 = vld [vmem:[%s4874_s6 + $0xc0] sm:$0xff] }
  0x78   : > { %4066 = vmatmul.mubr.bf16.gmra.mrb[20].mxu0 %v5092_v40  ;;  %3874 = vmatpush3.bf16.msra.mxu1 %v4992_v32  ;;  %v254_v32 = vpack.c.bf16 %v222_v45, %v221_v44  ;;  %v4652_v45 = vld [vmem:[%s5638_s1 + $0x1d8] sm:$0xff]  }
  0x79   : > { %3841 = vmatprep.mubr.bf16.mxu1 %v253_v41  ;;  %4069 = vmatprep.mubr.bf16.mxu0 %v5094_v42  ;;  %v240_v41 = vld [vmem:[%s4874_s6 + $0xc8] sm:$0xff] }
  0x7a   : > { %3875 = vmatprep.subr.bf16.mxu1 %v4639_v43 }
  0x7c   : > { %3876 = vmatpush3.bf16.msra.mxu1 %v4639_v43  ;;  %v4650_v43 = vld [vmem:[%s5638_s1 + $0x1d0] sm:$0xff]  }
  0x7d   : > { %3877 = vmatprep.subr.bf16.mxu1 %v4641_v52 }
  0x7f   : > { %3842 = vmatmul.mubr.bf16.gmra.mrb[4].mxu1 %v254_v32  ;;  %v248_v32 = vld [vmem:[%s4874_s6 + $0x108] sm:$0xff] }
  0x80   : > { %4070 = vmatmul.mubr.bf16.gmra.mrb[24].mxu0 %v5113_v55  ;;  %3845 = vmatprep.mubr.bf16.mxu1 %v255_v56  ;;  %v4658_v56 = vld [vmem:[%s5638_s1 + $0x1f0] sm:$0xff]   ;;  %v267_v59 = vpack.c.bf16 %v248_v32, %v247_v54  ;;  %v829_v32 = vld [vmem:[%s4874_s6 + $0xba] sm:$0xff] }
  0x81   : > { %4073 = vmatprep.mubr.bf16.mxu0 %v5115_v57  ;;  %3878 = vmatpush3.bf16.msra.mxu1 %v4641_v52  ;;  %v265_v52 = vpack.c.bf16 %v244_v48, %v243_v46  ;;  %v2470_v46 = vld [vmem:[%s4874_s6 + $0x45] sm:$0xff]  ;;  %v2471_v48 = vld [vmem:[%s4874_s6 + $0x4d] sm:$0xff] }
  0x82   : > { %3879 = vmatprep.subr.bf16.mxu1 %v4643_v58  ;;  %v828_v54 = vld [vmem:[%s4874_s6 + $0xb2] sm:$0xff] }
  0x85   : > { %3880 = vmatpush3.bf16.msra.mxu1 %v4643_v58 }
  0x86   : > { %3881 = vmatprep.subr.bf16.mxu1 %v4645_v5 }
  0x87   : > { %3846 = vmatmul.mubr.bf16.gmra.mrb[8].mxu1 %v256_v6 }
  0x88   : > { %4074 = vmatmul.mubr.bf16.gmra.mrb[28].mxu0 %v5133_v7  ;;  %3849 = vmatprep.mubr.bf16.mxu1 %v257_v8 }
  0x89   : > { %4077 = vmatprep.mubr.bf16.mxu0 %v5135_v9  ;;  %3882 = vmatpush3.bf16.msra.mxu1 %v4645_v5  ;;  %v811_v5 = vld [vmem:[%s4874_s6 + $0x2a] sm:$0xff] }
  0x8a   : > { %3883 = vmatprep.subr.bf16.mxu1 %v4647_v10  ;;  %v5228_v8 = vpack.c.bf16 %v811_v5, %v810_v4  ;;  %v833_v4 = vld [vmem:[%s4874_s6 + $0xda] sm:$0xff] }
  0x8b   : > { %v2476_v5 = vld [vmem:[%s4874_s6 + $0x75] sm:$0xff] }
  0x8d   : > { %3884 = vmatpush3.bf16.msra.mxu1 %v4647_v10  ;;  %v4655_v10 = vld [vmem:[%s5638_s1 + $0xc8] sm:$0xff]  }
  0x8e   : > { %3885 = vmatprep.subr.bf16.mxu1 %v4649_v19 }
  0x8f   : > { %3850 = vmatmul.mubr.bf16.gmra.mrb[12].mxu1 %v258_v20  ;;  %v819_v20 = vld [vmem:[%s4874_s6 + $0x6a] sm:$0xff] }
  0x90   : > { %4078 = vmatmul.mubr.bf16.gmra.mrb[32].mxu0 %v5151_v21  ;;  %3853 = vmatprep.mubr.bf16.mxu1 %v259_v22 }
  0x91   : > { %4097 = vmatprep.mubr.bf16.mxu0 %v4994_v33  ;;  %3886 = vmatpush3.bf16.msra.mxu1 %v4649_v19  ;;  %v237_v33 = vld [vmem:[%s4874_s6 + $0xb0] sm:$0xff]  ;;  %v818_v19 = vld [vmem:[%s4874_s6 + $0x62] sm:$0xff] }
  0x92   : > { %3887 = vmatprep.subr.bf16.mxu1 %v4651_v24  ;;  %v262_v44 = vpack.c.bf16 %v238_v38, %v237_v33  ;;  %v5285_v33 = vpack.c.bf16 %v821_v28, %v820_v26  ;;  %v2480_v26 = vld [vmem:[%s4874_s6 + $0x95] sm:$0xff]  ;;  %v2481_v28 = vld [vmem:[%s4874_s6 + $0x9d] sm:$0xff] }
  0x95   : > { %3888 = vmatpush3.bf16.msra.mxu1 %v4651_v24  ;;  %v5265_v24 = vpack.c.bf16 %v819_v20, %v818_v19  ;;  %v4670_v20 = vld [vmem:[%s5638_s1 + $0x228] sm:$0xff]  }
  0x96   : > { %3925 = vmatprep.subr.bf16.mxu1 %v5165_v31 }
  0x97   : > { %3854 = vmatmul.mubr.bf16.gmra.mrb[16].mxu1 %v260_v34  ;;  %v823_v34 = vld [vmem:[%s4874_s6 + $0x8a] sm:$0xff] }
  0x98   : > { %4098 = vmatmul.mubr.bf16.vlgmr.msra.gmra.mrb[0].mxu0 %v4996_v35  ;;  %3857 = vmatprep.mubr.bf16.mxu1 %v261_v36  ;;  %v263_v35 = vpack.c.bf16 %v240_v41, %v239_v39  ;;  %v2466_v36 = vld [vmem:[%s4874_s6 + $0x25] sm:$0xff]  ;;  %v4667_v41 = vld [vmem:[%s5638_s1 + $0xf8] sm:$0xff]  }
  0x99   : > { %4101 = vmatprep.mubr.bf16.mxu0 %v5015_v47  ;;  %4134 = vmatpush3.bf16.msra.mxu0 %v5075_v23  ;;  %v241_v47 = vld [vmem:[%s4874_s6 + $0xd0] sm:$0xff]  ;;  %v242_v23 = vld [vmem:[%s4874_s6 + $0xd8] sm:$0xff] }
  0x9a   : > { %4135 = vmatprep.subr.bf16.mxu0 %v4648_v37  ;;  %v264_v51 = vpack.c.bf16 %v242_v23, %v241_v47  ;;  %v826_v47 = vld [vmem:[%s4874_s6 + $0xa2] sm:$0xff]  ;;  %v827_v23 = vld [vmem:[%s4874_s6 + $0xaa] sm:$0xff] }
  0x9d   : > { %4136 = vmatpush3.bf16.msra.mxu0 %v4648_v37  ;;  %v2467_v37 = vld [vmem:[%s4874_s6 + $0x2d] sm:$0xff] }
  0x9e   : > { %4137 = vmatprep.subr.bf16.mxu0 %v4650_v43  ;;  %v2502_v39 = vpack.c.bf16 %v2467_v37, %v2466_v36  ;;  %v4671_v36 = vld [vmem:[%s5638_s1 + $0x230] sm:$0xff]  }
  0x9f   : > { %3858 = vmatmul.mubr.bf16.gmra.mrb[20].mxu1 %v262_v44  ;;  %v825_v44 = vld [vmem:[%s4874_s6 + $0x9a] sm:$0xff] }
  0xa0   : > { %4102 = vmatmul.mubr.bf16.gmra.mrb[4].mxu0 %v5017_v49  ;;  %3861 = vmatprep.mubr.bf16.mxu1 %v263_v35  ;;  %v4656_v49 = vld [vmem:[%s5638_s1 + $0x1e8] sm:$0xff]   ;;  %v2468_v35 = vld [vmem:[%s4874_s6 + $0x35] sm:$0xff] }
  0xa1   : > { %4105 = vmatprep.mubr.bf16.mxu0 %v5035_v61  ;;  %4138 = vmatpush3.bf16.msra.mxu0 %v4650_v43  ;;  %v245_v61 = vld [vmem:[%s4874_s6 + $0xf0] sm:$0xff] }
  0xa2   : > { %4139 = vmatprep.subr.bf16.mxu0 %v4652_v45  ;;  %v266_v58 = vpack.c.bf16 %v246_v53, %v245_v61  ;;  %v824_v43 = vld [vmem:[%s4874_s6 + $0x92] sm:$0xff]  ;;  %v4664_v61 = vld [vmem:[%s5638_s1 + $0x208] sm:$0xff]   ;;  %v5312_v53 = vld [vmem:[%s5638_s1 + $0x100] sm:$0xff]  }
  0xa5   : > { %4140 = vmatpush3.bf16.msra.mxu0 %v4652_v45  ;;  %v2469_v45 = vld [vmem:[%s4874_s6 + $0x3d] sm:$0xff] }
  0xa6   : > { %4141 = vmatprep.subr.bf16.mxu0 %v4654_v50 }
  0xa7   : > { %3862 = vmatmul.mubr.bf16.gmra.mrb[24].mxu1 %v264_v51  ;;  %v2503_v51 = vpack.c.bf16 %v2469_v45, %v2468_v35  ;;  %v2484_v35 = vld [vmem:[%s4874_s6 + $0xb5] sm:$0xff]  ;;  %v2485_v45 = vld [vmem:[%s4874_s6 + $0xbd] sm:$0xff] }
  0xa8   : > { %4106 = vmatmul.mubr.bf16.gmra.mrb[8].mxu0 %v5037_v63  ;;  %3865 = vmatprep.mubr.bf16.mxu1 %v265_v52  ;;  %v4660_v63 = vld [vmem:[%s5638_s1 + $0x1f8] sm:$0xff]   ;;  %v5304_v52 = vpack.c.bf16 %v827_v23, %v826_v47  ;;  %v2486_v47 = vld [vmem:[%s4874_s6 + $0xc5] sm:$0xff]  ;;  %v2487_v23 = vld [vmem:[%s4874_s6 + $0xcd] sm:$0xff] }
  0xa9   : > { %4109 = vmatprep.mubr.bf16.mxu0 %v5055_v11  ;;  %4142 = vmatpush3.bf16.msra.mxu0 %v4654_v50  ;;  %v249_v11 = vld [vmem:[%s4874_s6 + $0x110] sm:$0xff]  ;;  %v5302_v50 = vpack.c.bf16 %v825_v44, %v824_v43  ;;  %v841_v44 = vld [vmem:[%s4874_s6 + $0x11a] sm:$0xff] }
  0xaa   : > { %4143 = vmatprep.subr.bf16.mxu0 %v4656_v49  ;;  %v268_v2 = vpack.c.bf16 %v250_v60, %v249_v11  ;;  %v2474_v11 = vld [vmem:[%s4874_s6 + $0x65] sm:$0xff]  ;;  %v2475_v60 = vld [vmem:[%s4874_s6 + $0x6d] sm:$0xff] }
  0xab   : > { %v840_v43 = vld [vmem:[%s4874_s6 + $0x112] sm:$0xff] }
  0xad   : > { %4144 = vmatpush3.bf16.msra.mxu0 %v4656_v49  ;;  %v2504_v49 = vpack.c.bf16 %v2471_v48, %v2470_v46  ;;  %v5384_v46 = vpack.c.bf16 %v841_v44, %v840_v43  ;;  %v2511_v48 = vpack.c.bf16 %v2485_v45, %v2484_v35  ;;  %v2815_v43 = vld [vmem:[%s4874_s6 + $0xae] sm:$0xff] }
  0xae   : > { %4145 = vmatprep.subr.bf16.mxu0 %v4658_v56  ;;  %v1173_v45 = vld [vmem:[%s4874_s6 + $0x12a] sm:$0xff] }
  0xaf   : > { %3866 = vmatmul.mubr.bf16.gmra.mrb[28].mxu1 %v266_v58  ;;  %v2473_v58 = vld [vmem:[%s4874_s6 + $0x5d] sm:$0xff] }
  0xb0   : > { %4110 = vmatmul.mubr.bf16.gmra.mrb[12].mxu0 %v5057_v13  ;;  %3869 = vmatprep.mubr.bf16.mxu1 %v267_v59  ;;  %v842_v13 = vpack.c.bf16 %v807_v0, %v806_v62  ;;  %v830_v59 = vld [vmem:[%s4874_s6 + $0xc2] sm:$0xff]  ;;  %v4666_v62 = vld [vmem:[%s5638_s1 + $0x210] sm:$0xff]   ;;  %v5329_v0 = vpack.c.bf16 %v829_v32, %v828_v54 }
  0xb1   : > { %4113 = vmatprep.mubr.bf16.mxu0 %v5077_v25  ;;  %4146 = vmatpush3.bf16.msra.mxu0 %v4658_v56  ;;  %v808_v25 = vld [vmem:[%s4874_s6 + $0x12] sm:$0xff]  ;;  %v2490_v54 = vld [vmem:[%s4874_s6 + $0xe5] sm:$0xff] }
  0xb2   : > { %4147 = vmatprep.subr.bf16.mxu0 %v4660_v63  ;;  %v5226_v6 = vpack.c.bf16 %v809_v3, %v808_v25  ;;  %v2472_v56 = vld [vmem:[%s4874_s6 + $0x55] sm:$0xff]  ;;  %v2491_v32 = vld [vmem:[%s4874_s6 + $0xed] sm:$0xff] }
  0xb3   : > { %v4668_v25 = vld [vmem:[%s5638_s1 + $0x218] sm:$0xff]  }
  0xb4   : > { %v832_v3 = vld [vmem:[%s4874_s6 + $0xd2] sm:$0xff] }
  0xb5   : > { %4148 = vmatpush3.bf16.msra.mxu0 %v4660_v63  ;;  %v831_v63 = vld [vmem:[%s4874_s6 + $0xca] sm:$0xff] }
  0xb6   : > { %4185 = vmatprep.subr.bf16.mxu0 %v5217_v1 }
  0xb7   : > { %3870 = vmatmul.mubr.bf16.gmra.mrb[32].mxu1 %v268_v2  ;;  %v2505_v2 = vpack.c.bf16 %v2473_v58, %v2472_v56  ;;  %v2514_v58 = vpack.c.bf16 %v2491_v32, %v2490_v54  ;;  %v1488_v32 = vld [vmem:[%s4874_s6 + $0xa3] sm:$0xff] }
  0xb8   : > { %4114 = vmatmul.mubr.bf16.gmra.mrb[16].mxu0 %v5079_v27  ;;  %3889 = vmatprep.mubr.bf16.mxu1 %v842_v13  ;;  %v812_v27 = vld [vmem:[%s4874_s6 + $0x32] sm:$0xff]  ;;  %v5331_v13 = vpack.c.bf16 %v831_v63, %v830_v59  ;;  %v4674_v63 = vld [vmem:[%s5638_s1 + $0x108] sm:$0xff]  }
  0xb9   : > { %4117 = vmatprep.mubr.bf16.mxu0 %v5092_v40  ;;  %v814_v40 = vld [vmem:[%s4874_s6 + $0x42] sm:$0xff]  ;;  %v2492_v59 = vld [vmem:[%s4874_s6 + $0xf5] sm:$0xff] }
  0xba   : > { %v5247_v16 = vpack.c.bf16 %v815_v14, %v814_v40  ;;  %v2478_v40 = vld [vmem:[%s4874_s6 + $0x85] sm:$0xff]  ;;  %v2479_v14 = vld [vmem:[%s4874_s6 + $0x8d] sm:$0xff] }
  0xbb   : > { %v2508_v19 = vpack.c.bf16 %v2479_v14, %v2478_v40  ;;  %v4678_v40 = vld [vmem:[%s5638_s1 + $0x128] sm:$0xff]  }
  0xbf   : > { %3890 = vmatmul.mubr.bf16.vlgmr.msra.gmra.mrb[0].mxu1 %v5226_v6 }
  0xc0   : > { %4118 = vmatmul.mubr.bf16.gmra.mrb[20].mxu0 %v5094_v42  ;;  %3926 = vmatpush3.bf16.msra.mxu1 %v5165_v31  ;;  %v5245_v42 = vpack.c.bf16 %v813_v12, %v812_v27  ;;  %v822_v31 = vld [vmem:[%s4874_s6 + $0x82] sm:$0xff]  ;;  %v835_v12 = vld [vmem:[%s4874_s6 + $0xea] sm:$0xff] }
  0xc1   : > { %3893 = vmatprep.mubr.bf16.mxu1 %v5228_v8  ;;  %4121 = vmatprep.mubr.bf16.mxu0 %v5113_v55  ;;  %v816_v55 = vld [vmem:[%s4874_s6 + $0x52] sm:$0xff]  ;;  %v5287_v38 = vpack.c.bf16 %v823_v34, %v822_v31  ;;  %v834_v27 = vld [vmem:[%s4874_s6 + $0xe2] sm:$0xff] }
  0xc2   : > { %3927 = vmatprep.subr.bf16.mxu1 %v4655_v10  ;;  %v5263_v22 = vpack.c.bf16 %v817_v18, %v816_v55  ;;  %v5351_v18 = vpack.c.bf16 %v835_v12, %v834_v27  ;;  %v2482_v31 = vld [vmem:[%s4874_s6 + $0xa5] sm:$0xff]  ;;  %v2483_v34 = vld [vmem:[%s4874_s6 + $0xad] sm:$0xff] }
  0xc3   : > { %v2798_v27 = vld [vmem:[%s4874_s6 + $0x26] sm:$0xff]  ;;  %v2799_v12 = vld [vmem:[%s4874_s6 + $0x2e] sm:$0xff] }
  0xc4   : > { %3928 = vmatpush3.bf16.msra.mxu1 %v4655_v10  ;;  %v2477_v10 = vld [vmem:[%s4874_s6 + $0x7d] sm:$0xff] }
  0xc5   : > { %3929 = vmatprep.subr.bf16.mxu1 %v4657_v15  ;;  %v2507_v55 = vpack.c.bf16 %v2477_v10, %v2476_v5  ;;  %v2500_v5 = vld [vmem:[%s4874_s6 + $0x135] sm:$0xff]  ;;  %v2501_v10 = vld [vmem:[%s4874_s6 + $0x13d] sm:$0xff] }
  0xc6   : > { %v2519_v14 = vpack.c.bf16 %v2501_v10, %v2500_v5  ;;  %v2827_v5 = vld [vmem:[%s4874_s6 + $0x10e] sm:$0xff] }
  0xc7   : > { %3894 = vmatmul.mubr.bf16.gmra.mrb[4].mxu1 %v5245_v42 }
  0xc8   : > { %4122 = vmatmul.mubr.bf16.gmra.mrb[24].mxu0 %v5115_v57  ;;  %3897 = vmatprep.mubr.bf16.mxu1 %v5247_v16  ;;  %v4661_v57 = vld [vmem:[%s5638_s1 + $0xe0] sm:$0xff]  }
  0xc9   : > { %4125 = vmatprep.mubr.bf16.mxu0 %v5133_v7  ;;  %3930 = vmatpush3.bf16.msra.mxu1 %v4657_v15  ;;  %v4663_v7 = vld [vmem:[%s5638_s1 + $0xe8] sm:$0xff]   ;;  %v4669_v15 = vld [vmem:[%s5638_s1 + $0x220] sm:$0xff]  }
  0xca   : > { %3931 = vmatprep.subr.bf16.mxu1 %v4659_v17 }
  0xcd   : > { %3932 = vmatpush3.bf16.msra.mxu1 %v4659_v17  ;;  %v5349_v17 = vpack.c.bf16 %v833_v4, %v832_v3  ;;  %v4676_v3 = vld [vmem:[%s5638_s1 + $0x118] sm:$0xff]  }
  0xce   : > { %3933 = vmatprep.subr.bf16.mxu1 %v4661_v57 }
  0xcf   : > { %3898 = vmatmul.mubr.bf16.gmra.mrb[8].mxu1 %v5263_v22 }
  0xd0   : > { %4126 = vmatmul.mubr.bf16.gmra.mrb[28].mxu0 %v5135_v9  ;;  %3901 = vmatprep.mubr.bf16.mxu1 %v5265_v24  ;;  %v4665_v9 = vld [vmem:[%s5638_s1 + $0xf0] sm:$0xff]  }
  0xd1   : > { %4129 = vmatprep.mubr.bf16.mxu0 %v5151_v21  ;;  %3934 = vmatpush3.bf16.msra.mxu1 %v4661_v57  ;;  %v2187_v21 = vpack.c.bf16 %v2169_v30, %v2168_v29  ;;  %v836_v57 = vld [vmem:[%s4874_s6 + $0xf2] sm:$0xff]  ;;  %v838_v29 = vld [vmem:[%s4874_s6 + $0x102] sm:$0xff]  ;;  %v839_v30 = vld [vmem:[%s4874_s6 + $0x10a] sm:$0xff] }
  0xd2   : > { %3935 = vmatprep.subr.bf16.mxu1 %v4663_v7 }
  0xd5   : > { %3936 = vmatpush3.bf16.msra.mxu1 %v4663_v7  ;;  %v837_v7 = vld [vmem:[%s4874_s6 + $0xfa] sm:$0xff] }
  0xd6   : > { %3937 = vmatprep.subr.bf16.mxu1 %v4665_v9  ;;  %v5369_v37 = vpack.c.bf16 %v837_v7, %v836_v57  ;;  %v4680_v57 = vld [vmem:[%s5638_s1 + $0x138] sm:$0xff]  }
  0xd7   : > { %3902 = vmatmul.mubr.bf16.gmra.mrb[12].mxu1 %v5285_v33 }
  0xd8   : > { %4130 = vmatmul.mubr.bf16.gmra.mrb[32].mxu0 %v2187_v21  ;;  %3905 = vmatprep.mubr.bf16.mxu1 %v5287_v38  ;;  %v5371_v21 = vpack.c.bf16 %v839_v30, %v838_v29  ;;  %v2807_v29 = vld [vmem:[%s4874_s6 + $0x6e] sm:$0xff] }
  0xd9   : > { %4149 = vmatprep.mubr.bf16.mxu0 %v2502_v39  ;;  %3938 = vmatpush3.bf16.msra.mxu1 %v4665_v9  ;;  %v2509_v9 = vpack.c.bf16 %v2481_v28, %v2480_v26  ;;  %v2510_v39 = vpack.c.bf16 %v2483_v34, %v2482_v31  ;;  %v2805_v26 = vld [vmem:[%s4874_s6 + $0x5e] sm:$0xff]  ;;  %v2806_v28 = vld [vmem:[%s4874_s6 + $0x66] sm:$0xff] }
  0xda   : > { %3939 = vmatprep.subr.bf16.mxu1 %v4667_v41  ;;  %v2838_v31 = vpack.c.bf16 %v2807_v29, %v2806_v28  ;;  %v2809_v34 = vld [vmem:[%s4874_s6 + $0x7e] sm:$0xff]  ;;  %v1501_v29 = vld [vmem:[%s4874_s6 + $0x10b] sm:$0xff] }
  0xdb   : > { %v1500_v28 = vld [vmem:[%s4874_s6 + $0x103] sm:$0xff] }
  0xdd   : > { %3940 = vmatpush3.bf16.msra.mxu1 %v4667_v41  ;;  %v4672_v41 = vld [vmem:[%s5638_s1 + $0x238] sm:$0xff]  }
  0xde   : > { %4237 = vmatprep.subr.bf16.mxu1 %v5312_v53 }
  0xdf   : > { %3906 = vmatmul.mubr.bf16.gmra.mrb[16].mxu1 %v5302_v50 }
  0xe0   : > { %4150 = vmatmul.mubr.bf16.vlgmr.msra.gmra.mrb[0].mxu0 %v2503_v51  ;;  %3909 = vmatprep.mubr.bf16.mxu1 %v5304_v52  ;;  %v2512_v51 = vpack.c.bf16 %v2487_v23, %v2486_v47  ;;  %v2817_v47 = vld [vmem:[%s4874_s6 + $0xbe] sm:$0xff]  ;;  %v1486_v23 = vld [vmem:[%s4874_s6 + $0x93] sm:$0xff] }
  0xe1   : > { %4153 = vmatprep.mubr.bf16.mxu0 %v2504_v49  ;;  %4186 = vmatpush3.bf16.msra.mxu0 %v5217_v1  ;;  %v2506_v1 = vpack.c.bf16 %v2475_v60, %v2474_v11  ;;  %v2488_v49 = vld [vmem:[%s4874_s6 + $0xd5] sm:$0xff]  ;;  %v2494_v11 = vld [vmem:[%s4874_s6 + $0x105] sm:$0xff]  ;;  %v2495_v60 = vld [vmem:[%s4874_s6 + $0x10d] sm:$0xff] }
  0xe2   : > { %4187 = vmatprep.subr.bf16.mxu0 %v4664_v61 }
  0xe5   : > { %4188 = vmatpush3.bf16.msra.mxu0 %v4664_v61  ;;  %v2489_v61 = vld [vmem:[%s4874_s6 + $0xdd] sm:$0xff] }
  0xe6   : > { %4189 = vmatprep.subr.bf16.mxu0 %v4666_v62  ;;  %v2513_v56 = vpack.c.bf16 %v2489_v61, %v2488_v49  ;;  %v2819_v49 = vld [vmem:[%s4874_s6 + $0xce] sm:$0xff] }
  0xe7   : > { %3910 = vmatmul.mubr.bf16.gmra.mrb[20].mxu1 %v5329_v0 }
  0xe8   : > { %4154 = vmatmul.mubr.bf16.gmra.mrb[4].mxu0 %v2505_v2  ;;  %3913 = vmatprep.mubr.bf16.mxu1 %v5331_v13  ;;  %v2497_v2 = vld [vmem:[%s4874_s6 + $0x11d] sm:$0xff] }
  0xe9   : > { %4157 = vmatprep.mubr.bf16.mxu0 %v2506_v1  ;;  %4190 = vmatpush3.bf16.msra.mxu0 %v4666_v62  ;;  %v2516_v62 = vpack.c.bf16 %v2495_v60, %v2494_v11  ;;  %v2498_v1 = vld [vmem:[%s4874_s6 + $0x125] sm:$0xff]  ;;  %v2823_v60 = vld [vmem:[%s4874_s6 + $0xee] sm:$0xff] }
  0xea   : > { %4191 = vmatprep.subr.bf16.mxu0 %v4668_v25  ;;  %v2822_v11 = vld [vmem:[%s4874_s6 + $0xe6] sm:$0xff] }
  0xed   : > { %4192 = vmatpush3.bf16.msra.mxu0 %v4668_v25  ;;  %v2499_v25 = vld [vmem:[%s4874_s6 + $0x12d] sm:$0xff] }
  0xee   : > { %4193 = vmatprep.subr.bf16.mxu0 %v4669_v15 }
  0xef   : > { %3914 = vmatmul.mubr.bf16.gmra.mrb[24].mxu1 %v5349_v17 }
  0xf0   : > { %4158 = vmatmul.mubr.bf16.gmra.mrb[8].mxu0 %v2507_v55  ;;  %3917 = vmatprep.mubr.bf16.mxu1 %v5351_v18  ;;  %v2801_v55 = vld [vmem:[%s4874_s6 + $0x3e] sm:$0xff] }
  0xf1   : > { %4161 = vmatprep.mubr.bf16.mxu0 %v2508_v19  ;;  %4194 = vmatpush3.bf16.msra.mxu0 %v4669_v15  ;;  %v2800_v15 = vld [vmem:[%s4874_s6 + $0x36] sm:$0xff]  ;;  %v2802_v19 = vld [vmem:[%s4874_s6 + $0x46] sm:$0xff] }
  0xf2   : > { %4195 = vmatprep.subr.bf16.mxu0 %v4670_v20  ;;  %v2835_v7 = vpack.c.bf16 %v2801_v55, %v2800_v15  ;;  %v2829_v15 = vld [vmem:[%s4874_s6 + $0x11e] sm:$0xff]  ;;  %v1498_v55 = vld [vmem:[%s4874_s6 + $0xf3] sm:$0xff] }
  0xf5   : > { %4196 = vmatpush3.bf16.msra.mxu0 %v4670_v20  ;;  %v2803_v20 = vld [vmem:[%s4874_s6 + $0x4e] sm:$0xff] }
  0xf6   : > { %4197 = vmatprep.subr.bf16.mxu0 %v4671_v36 }
  0xf7   : > { %3918 = vmatmul.mubr.bf16.gmra.mrb[28].mxu1 %v5369_v37 }
  0xf8   : > { %4162 = vmatmul.mubr.bf16.gmra.mrb[12].mxu0 %v2509_v9  ;;  %3921 = vmatprep.mubr.bf16.mxu1 %v5371_v21 }
  0xf9   : > { %4165 = vmatprep.mubr.bf16.mxu0 %v2510_v39  ;;  %4198 = vmatpush3.bf16.msra.mxu0 %v4671_v36  ;;  %v2811_v36 = vld [vmem:[%s4874_s6 + $0x8e] sm:$0xff] }
  0xfa   : > { %4199 = vmatprep.subr.bf16.mxu0 %v4672_v41 }
  0xfd   : > { %4200 = vmatpush3.bf16.msra.mxu0 %v4672_v41  ;;  %v2814_v41 = vld [vmem:[%s4874_s6 + $0xa6] sm:$0xff] }
  0xfe   : > { %v2842_v35 = vpack.c.bf16 %v2815_v43, %v2814_v41 }
  0xff   : > { %3922 = vmatmul.mubr.bf16.gmra.mrb[32].mxu1 %v5384_v46 }
 0x100   : > { %4166 = vmatmul.mubr.bf16.gmra.mrb[16].mxu0 %v2511_v48  ;;  %3941 = vmatprep.mubr.bf16.mxu1 %v5226_v6  ;;  %v2493_v6 = vld [vmem:[%s4874_s6 + $0xfd] sm:$0xff] }
 0x101   : > { %4169 = vmatprep.mubr.bf16.mxu0 %v2512_v51  ;;  %v1487_v48 = vld [vmem:[%s4874_s6 + $0x9b] sm:$0xff]  ;;  %v2818_v51 = vld [vmem:[%s4874_s6 + $0xc6] sm:$0xff] }
 0x102   : > { %v2844_v54 = vpack.c.bf16 %v2819_v49, %v2818_v51 }
 0x107   : > { %3942 = vmatmul.mubr.bf16.vlgmr.msra.gmra.mrb[0].mxu1 %v5228_v8  ;;  %v2515_v8 = vpack.c.bf16 %v2493_v6, %v2492_v59  ;;  %v2821_v59 = vld [vmem:[%s4874_s6 + $0xde] sm:$0xff]  ;;  %v1490_v6 = vld [vmem:[%s4874_s6 + $0xb3] sm:$0xff] }
 0x108   : > { %4170 = vmatmul.mubr.bf16.gmra.mrb[20].mxu0 %v2513_v56  ;;  %4245 = vmatpush3.bf16.msra.mxu1 %v5312_v53  ;;  %v2496_v53 = vld [vmem:[%s4874_s6 + $0x115] sm:$0xff]  ;;  %v1489_v56 = vld [vmem:[%s4874_s6 + $0xab] sm:$0xff] }
 0x109   : > { %3945 = vmatprep.mubr.bf16.mxu1 %v5245_v42  ;;  %4173 = vmatprep.mubr.bf16.mxu0 %v2514_v58  ;;  %v4675_v42 = vld [vmem:[%s5638_s1 + $0x110] sm:$0xff]   ;;  %v2517_v4 = vpack.c.bf16 %v2497_v2, %v2496_v53  ;;  %v2846_v53 = vpack.c.bf16 %v2823_v60, %v2822_v11  ;;  %v1492_v2 = vld [vmem:[%s4874_s6 + $0xc3] sm:$0xff] }
 0x10a   : > { %4238 = vmatprep.subr.bf16.mxu1 %v4674_v63  ;;  %v2820_v58 = vld [vmem:[%s4874_s6 + $0xd6] sm:$0xff] }
 0x10c   : > { %4246 = vmatpush3.bf16.msra.mxu1 %v4674_v63  ;;  %v1491_v63 = vld [vmem:[%s4874_s6 + $0xbb] sm:$0xff] }
 0x10d   : > { %4239 = vmatprep.subr.bf16.mxu1 %v4675_v42 }
 0x10f   : > { %3946 = vmatmul.mubr.bf16.gmra.mrb[4].mxu1 %v5247_v16  ;;  %v2518_v16 = vpack.c.bf16 %v2499_v25, %v2498_v1  ;;  %v1493_v1 = vld [vmem:[%s4874_s6 + $0xcb] sm:$0xff]  ;;  %v2824_v25 = vld [vmem:[%s4874_s6 + $0xf6] sm:$0xff] }
 0x110   : > { %4174 = vmatmul.mubr.bf16.gmra.mrb[24].mxu0 %v2515_v8  ;;  %3949 = vmatprep.mubr.bf16.mxu1 %v5263_v22  ;;  %v4677_v22 = vld [vmem:[%s5638_s1 + $0x120] sm:$0xff]   ;;  %v1515_v8 = vpack.c.bf16 %v1489_v56, %v1488_v32  ;;  %v1517_v10 = vpack.c.bf16 %v1493_v1, %v1492_v2 }
 0x111   : > { %4177 = vmatprep.mubr.bf16.mxu0 %v2516_v62  ;;  %4247 = vmatpush3.bf16.msra.mxu1 %v4675_v42  ;;  %v2845_v62 = vpack.c.bf16 %v2821_v59, %v2820_v58  ;;  %v1516_v42 = vpack.c.bf16 %v1491_v63, %v1490_v6  ;;  %v5504_v56 = vld [vmem:[%s5639_s2] ss:$0 sm:$0xff] }
 0x112   : > { %4240 = vmatprep.subr.bf16.mxu1 %v4676_v3 }
 0x115   : > { %4248 = vmatpush3.bf16.msra.mxu1 %v4676_v3  ;;  %v2825_v3 = vld [vmem:[%s4874_s6 + $0xfe] sm:$0xff] }
 0x116   : > { %4241 = vmatprep.subr.bf16.mxu1 %v4677_v22 }
 0x117   : > { %3950 = vmatmul.mubr.bf16.gmra.mrb[8].mxu1 %v5265_v24  ;;  %v2834_v24 = vpack.c.bf16 %v2799_v12, %v2798_v27  ;;  %v2847_v27 = vpack.c.bf16 %v2825_v3, %v2824_v25 }
 0x118   : > { %4178 = vmatmul.mubr.bf16.gmra.mrb[28].mxu0 %v2517_v4  ;;  %3953 = vmatprep.mubr.bf16.mxu1 %v5285_v33  ;;  %v4679_v33 = vld [vmem:[%s5638_s1 + $0x130] sm:$0xff]  }
 0x119   : > { %4181 = vmatprep.mubr.bf16.mxu0 %v2518_v16  ;;  %4249 = vmatpush3.bf16.msra.mxu1 %v4677_v22  ;;  %v1494_v4 = vld [vmem:[%s4874_s6 + $0xd3] sm:$0xff]  ;;  %v1495_v16 = vld [vmem:[%s4874_s6 + $0xdb] sm:$0xff]  ;;  %v2826_v22 = vld [vmem:[%s4874_s6 + $0x106] sm:$0xff] }
 0x11a   : > { %4242 = vmatprep.subr.bf16.mxu1 %v4678_v40  ;;  %v1518_v12 = vpack.c.bf16 %v1495_v16, %v1494_v4 }
 0x11d   : > { %4250 = vmatpush3.bf16.msra.mxu1 %v4678_v40  ;;  %v2848_v40 = vpack.c.bf16 %v2827_v5, %v2826_v22 }
 0x11e   : > { %4243 = vmatprep.subr.bf16.mxu1 %v4679_v33 }
 0x11f   : > { %3954 = vmatmul.mubr.bf16.gmra.mrb[12].mxu1 %v5287_v38  ;;  %v2836_v38 = vpack.c.bf16 %v2803_v20, %v2802_v19  ;;  %v1499_v19 = vld [vmem:[%s4874_s6 + $0xfb] sm:$0xff]  ;;  %v2830_v20 = vld [vmem:[%s4874_s6 + $0x126] sm:$0xff] }
 0x120   : > { %4182 = vmatmul.mubr.bf16.gmra.mrb[32].mxu0 %v2519_v14  ;;  %3957 = vmatprep.mubr.bf16.mxu1 %v5302_v50  ;;  %v2804_v50 = vld [vmem:[%s4874_s6 + $0x56] sm:$0xff]  ;;  %v1496_v14 = vld [vmem:[%s4874_s6 + $0xe3] sm:$0xff] }
 0x121   : > { %4201 = vmatprep.mubr.bf16.mxu0 %v2834_v24  ;;  %4251 = vmatpush3.bf16.msra.mxu1 %v4679_v33  ;;  %v2837_v30 = vpack.c.bf16 %v2805_v26, %v2804_v50  ;;  %v1497_v24 = vld [vmem:[%s4874_s6 + $0xeb] sm:$0xff]  ;;  %v2828_v33 = vld [vmem:[%s4874_s6 + $0x116] sm:$0xff]  ;;  %v1520_v50 = vpack.c.bf16 %v1499_v19, %v1498_v55 }
 0x122   : > { %4244 = vmatprep.subr.bf16.mxu1 %v4680_v57 }
 0x125   : > { %4252 = vmatpush3.bf16.msra.mxu1 %v4680_v57  ;;  %v2831_v57 = vld [vmem:[%s4874_s6 + $0x12e] sm:$0xff] }
 0x126   : > { %v2850_v26 = vpack.c.bf16 %v2831_v57, %v2830_v20 }
 0x127   : > { %3958 = vmatmul.mubr.bf16.gmra.mrb[16].mxu1 %v5304_v52  ;;  %v2808_v52 = vld [vmem:[%s4874_s6 + $0x76] sm:$0xff] }
 0x128   : > { %4202 = vmatmul.mubr.bf16.vlgmr.msra.gmra.mrb[0].mxu0 %v2835_v7  ;;  %3961 = vmatprep.mubr.bf16.mxu1 %v5329_v0  ;;  %v2810_v0 = vld [vmem:[%s4874_s6 + $0x86] sm:$0xff]  ;;  %v2839_v9 = vpack.c.bf16 %v2809_v34, %v2808_v52  ;;  %v1519_v7 = vpack.c.bf16 %v1497_v24, %v1496_v14  ;;  %v1502_v52 = vld [vmem:[%s4874_s6 + $0x113] sm:$0xff]  ;;  %v1503_v34 = vld [vmem:[%s4874_s6 + $0x11b] sm:$0xff] }
 0x129   : > { %4205 = vmatprep.mubr.bf16.mxu0 %v2836_v38  ;;  %v2840_v39 = vpack.c.bf16 %v2811_v36, %v2810_v0  ;;  %v2849_v38 = vpack.c.bf16 %v2829_v15, %v2828_v33  ;;  %v1521_v0 = vpack.c.bf16 %v1501_v29, %v1500_v28 }
 0x12f   : > { %3962 = vmatmul.mubr.bf16.gmra.mrb[20].mxu1 %v5331_v13  ;;  %v2812_v13 = vld [vmem:[%s4874_s6 + $0x96] sm:$0xff] }
 0x130   : > { %4206 = vmatmul.mubr.bf16.gmra.mrb[4].mxu0 %v2837_v30  ;;  %3965 = vmatprep.mubr.bf16.mxu1 %v5349_v17  ;;  %v2813_v17 = vld [vmem:[%s4874_s6 + $0x9e] sm:$0xff]  ;;  %v2832_v30 = vld [vmem:[%s4874_s6 + $0x136] sm:$0xff] }
 0x131   : > { %4209 = vmatprep.mubr.bf16.mxu0 %v2838_v31  ;;  %v2841_v44 = vpack.c.bf16 %v2813_v17, %v2812_v13  ;;  %v2833_v31 = vld [vmem:[%s4874_s6 + $0x13e] sm:$0xff]  ;;  %v1505_v13 = vld [vmem:[%s4874_s6 + $0x12b] sm:$0xff] }
 0x132   : > { %v2851_v36 = vpack.c.bf16 %v2833_v31, %v2832_v30 }
 0x137   : > { %3966 = vmatmul.mubr.bf16.gmra.mrb[24].mxu1 %v5351_v18  ;;  %v1172_v18 = vld [vmem:[%s4874_s6 + $0x122] sm:$0xff] }
 0x138   : > { %4210 = vmatmul.mubr.bf16.gmra.mrb[8].mxu0 %v2839_v9  ;;  %3969 = vmatprep.mubr.bf16.mxu1 %v5369_v37  ;;  %v2816_v37 = vld [vmem:[%s4874_s6 + $0xb6] sm:$0xff]  ;;  %v1522_v9 = vpack.c.bf16 %v1503_v34, %v1502_v52 }
 0x139   : > { %4213 = vmatprep.mubr.bf16.mxu0 %v2840_v39  ;;  %v2843_v61 = vpack.c.bf16 %v2817_v47, %v2816_v37  ;;  %v1504_v39 = vld [vmem:[%s4874_s6 + $0x123] sm:$0xff]  ;;  %s199_s6 = sand.u32 1, %s4743_s13  }
 0x13a   : > { %v1523_v17 = vpack.c.bf16 %v1505_v13, %v1504_v39  ;;  %s4541_s29 = smul.u32 288, %s199_s6  ;;  %s5591_s11 = scalar_lea.sflag [#allocation3], %s199_s6 }
 0x13c   : > { %s5508_s5 = scalar_lea.vmem [#allocation2], %s4541_s29 }
 0x13d   : > { %s3224_s8 = sshll.u32 %s5508_s5, 4  ;;  %s5583_s8 = int_to_ptr.vmem [resolvable:$true] %s3224_s8 }
 0x13e   : > { %s4681_s18 = scalar_lea.vmem %s5583_s8, 4608  ;;  %p4688_p1 = scmp.lt.s32.totalorder %s5583_s8, %s4686_s21 }
 0x13f   : > { %3970 = vmatmul.mubr.bf16.gmra.mrb[28].mxu1 %v5371_v21  ;;  %v1191_v21 = vpack.c.bf16 %v1173_v45, %v1172_v18  ;;  %p4682_p12 = scmp.ne.s32.totalorder %s5583_s8, %s4681_s18  ;;  %p4689_p2 = scmp.lt.s32.totalorder %s4687_s23, %s4681_s18 }
 0x140   : > { %4214 = vmatmul.mubr.bf16.gmra.mrb[12].mxu0 %v2841_v44  ;;  %3973 = vmatprep.mubr.bf16.mxu1 %v5384_v46  ;;  %v1514_v46 = vpack.c.bf16 %v1487_v48, %v1486_v23 }
 0x141   : > { %4217 = vmatprep.mubr.bf16.mxu0 %v2842_v35  ;;  %p4683_p13 = pnand %p4682_p12, %p4824_p4  ;;  %p4690_p3 = por %p4689_p2, %p4688_p1 }
 0x143   : > { %p4684_p0 = pneg %p4683_p13 }
 0x145   : > { %p4691_p5 = pnand %p4690_p3, %p4684_p0 }
 0x147   : > { %3974 = vmatmul.mubr.bf16.gmra.mrb[32].mxu1 %v1191_v21 }
 0x148   : > { %4218 = vmatmul.mubr.bf16.gmra.mrb[16].mxu0 %v2843_v61  ;;  %4009 = vmatprep.mubr.bf16.mxu1 %v1514_v46 }
 0x149   : > { %4221 = vmatprep.mubr.bf16.mxu0 %v2844_v54 }
 0x14f   : > { %4010 = vmatmul.mubr.bf16.vlgmr.msra.gmra.mrb[16].mxu1 %v1515_v8 }
 0x150   : > { %4222 = vmatmul.mubr.bf16.gmra.mrb[20].mxu0 %v2845_v62  ;;  %4013 = vmatprep.mubr.bf16.mxu1 %v1516_v42 }
 0x151   : > { %4225 = vmatprep.mubr.bf16.mxu0 %v2846_v53 }
 0x157   : > { %4014 = vmatmul.mubr.bf16.gmra.mrb[20].mxu1 %v1517_v10 }
 0x158   : > { %4226 = vmatmul.mubr.bf16.gmra.mrb[24].mxu0 %v2847_v27  ;;  %4017 = vmatprep.mubr.bf16.mxu1 %v1518_v12 }
 0x159   : > { %4229 = vmatprep.mubr.bf16.mxu0 %v2848_v40 }
 0x15f   : > { %4018 = vmatmul.mubr.bf16.gmra.mrb[24].mxu1 %v1519_v7 }
 0x160   : > { %4230 = vmatmul.mubr.bf16.gmra.mrb[28].mxu0 %v2849_v38  ;;  %4021 = vmatprep.mubr.bf16.mxu1 %v1520_v50 }
 0x161   : > { %4233 = vmatprep.mubr.bf16.mxu0 %v2850_v26 }
 0x167   : > { %4022 = vmatmul.mubr.bf16.gmra.mrb[28].mxu1 %v1521_v0 }
 0x168   : > { %4234 = vmatmul.mubr.bf16.gmra.mrb[32].mxu0 %v2851_v36  ;;  %4025 = vmatprep.mubr.bf16.mxu1 %v1522_v9 }
 0x16f   : > { %4026 = vmatmul.mubr.bf16.gmra.mrb[32].mxu1 %v1523_v17 }
 0x1da   : > { %v3943_v41 = vpop.f32.mrb[0].mxu1 }
 0x1db   : > { %v1291_v43 = vpop.f32.mrb[1].mxu1 }
 0x1dc   : > { %v3944_v44 = vpop.f32.mrb[2].mxu1 }
 0x1dd   : > { %v1294_v35 = vpop.f32.mrb[3].mxu1 }
 0x1e2   : > { %v3947_v18 = vpop.f32.mrb[4].mxu1 }
 0x1e3   : > { %v1307_v45 = vpop.f32.mrb[5].mxu1 }
 0x1e4   : > { %v3948_v37 = vpop.f32.mrb[6].mxu1 }
 0x1e5   : > { %v1310_v47 = vpop.f32.mrb[7].mxu1 }
 0x1ea   : > { %v3951_v23 = vpop.f32.mrb[8].mxu1 }
 0x1eb   : > { %v1323_v48 = vpop.f32.mrb[9].mxu1 }
 0x1ec   : > { %v3952_v51 = vpop.f32.mrb[10].mxu1 }
 0x1ed   : > { %v1326_v49 = vpop.f32.mrb[11].mxu1 }
 0x1f2   : > { %v3955_v21 = vpop.f32.mrb[12].mxu1 }
 0x1f3   : > { %v1339_v61 = vpop.f32.mrb[13].mxu1 }
 0x1f4   : > { %v3956_v46 = vpop.f32.mrb[14].mxu1 }
 0x1f5   : > { %v1342_v54 = vpop.f32.mrb[15].mxu1 }
 0x1fb   : > { %v4203_v32 = vpop.f32.mrb[0].mxu0 }
 0x1fc   : > { %v4253_v58 = vadd.f32 %v4203_v32, %v3943_v41  ;;  %v2951_v59 = vpop.f32.mrb[1].mxu0 }
 0x1fd   : > { %v4254_v6 = vadd.f32 %v2951_v59, %v1291_v43  ;;  %v4204_v63 = vpop.f32.mrb[2].mxu0 }
 0x1fe   : > { %v3139_v11 = vadd.f32 %v4253_v58, %v5504_v56  ;;  %v4255_v60 = vadd.f32 %v4204_v63, %v3944_v44  ;;  %v2954_v8 = vpop.f32.mrb[3].mxu0 }
 0x1ff   : > { %v3137_v62 = vadd.f32 %v4254_v6, %v5504_v56  ;;  %v4256_v42 = vadd.f32 %v2954_v8, %v1294_v35 }
 0x200   : > { %3175 = vst [vmem:[%s5508_s5 + $0x10] sm:$0xff] %v3139_v11  ;;  %v3140_v53 = vadd.f32 %v4255_v60, %v5504_v56 }
 0x201   : > { %3173 = vst [vmem:[%s5508_s5] sm:$0xff] %v3137_v62  ;;  %v3138_v2 = vadd.f32 %v4256_v42, %v5504_v56 }
 0x202   : > { %3176 = vst [vmem:[%s5508_s5 + $0x18] sm:$0xff] %v3140_v53 }
 0x203   : > { %3174 = vst [vmem:[%s5508_s5 + $0x8] sm:$0xff] %v3138_v2  ;;  %v4207_v1 = vpop.f32.mrb[4].mxu0 }
 0x204   : > { %v4257_v25 = vadd.f32 %v4207_v1, %v3947_v18  ;;  %v2967_v3 = vpop.f32.mrb[5].mxu0 }
 0x205   : > { %v4258_v4 = vadd.f32 %v2967_v3, %v1307_v45  ;;  %v4208_v16 = vpop.f32.mrb[6].mxu0 }
 0x206   : > { %v3143_v22 = vadd.f32 %v4257_v25, %v5504_v56  ;;  %v4259_v5 = vadd.f32 %v4208_v16, %v3948_v37  ;;  %v2970_v10 = vpop.f32.mrb[7].mxu0 }
 0x207   : > { %v3141_v27 = vadd.f32 %v4258_v4, %v5504_v56  ;;  %v4260_v12 = vadd.f32 %v2970_v10, %v1310_v47 }
 0x208   : > { %3179 = vst [vmem:[%s5508_s5 + $0x30] sm:$0xff] %v3143_v22  ;;  %v3144_v40 = vadd.f32 %v4259_v5, %v5504_v56 }
 0x209   : > { %3177 = vst [vmem:[%s5508_s5 + $0x20] sm:$0xff] %v3141_v27  ;;  %v3142_v14 = vadd.f32 %v4260_v12, %v5504_v56 }
 0x20a   : > { %3180 = vst [vmem:[%s5508_s5 + $0x38] sm:$0xff] %v3144_v40 }
 0x20b   : > { %3178 = vst [vmem:[%s5508_s5 + $0x28] sm:$0xff] %v3142_v14  ;;  %v4211_v24 = vpop.f32.mrb[8].mxu0 }
 0x20c   : > { %v4261_v33 = vadd.f32 %v4211_v24, %v3951_v23  ;;  %v2983_v15 = vpop.f32.mrb[9].mxu0 }
 0x20d   : > { %v4262_v55 = vadd.f32 %v2983_v15, %v1323_v48  ;;  %v4212_v19 = vpop.f32.mrb[10].mxu0 }
 0x20e   : > { %v3147_v20 = vadd.f32 %v4261_v33, %v5504_v56  ;;  %v4263_v57 = vadd.f32 %v4212_v19, %v3952_v51  ;;  %v2986_v7 = vpop.f32.mrb[11].mxu0 }
 0x20f   : > { %v3145_v38 = vadd.f32 %v4262_v55, %v5504_v56  ;;  %v4264_v50 = vadd.f32 %v2986_v7, %v1326_v49 }
 0x210   : > { %3183 = vst [vmem:[%s5508_s5 + $0x50] sm:$0xff] %v3147_v20  ;;  %v3148_v26 = vadd.f32 %v4263_v57, %v5504_v56 }
 0x211   : > { %3181 = vst [vmem:[%s5508_s5 + $0x40] sm:$0xff] %v3145_v38  ;;  %v3146_v28 = vadd.f32 %v4264_v50, %v5504_v56 }
 0x212   : > { %3184 = vst [vmem:[%s5508_s5 + $0x58] sm:$0xff] %v3148_v26 }
 0x213   : > { %3182 = vst [vmem:[%s5508_s5 + $0x48] sm:$0xff] %v3146_v28  ;;  %v4215_v29 = vpop.f32.mrb[12].mxu0 }
 0x214   : > { %v4265_v30 = vadd.f32 %v4215_v29, %v3955_v21  ;;  %v2999_v31 = vpop.f32.mrb[13].mxu0 }
 0x215   : > { %v4266_v52 = vadd.f32 %v2999_v31, %v1339_v61  ;;  %v4216_v34 = vpop.f32.mrb[14].mxu0 }
 0x216   : > { %v3151_v0 = vadd.f32 %v4265_v30, %v5504_v56  ;;  %v4267_v36 = vadd.f32 %v4216_v34, %v3956_v46  ;;  %v3002_v9 = vpop.f32.mrb[15].mxu0 }
 0x217   : > { %v3149_v39 = vadd.f32 %v4266_v52, %v5504_v56  ;;  %v4268_v13 = vadd.f32 %v3002_v9, %v1342_v54 }
 0x218   : > { %3187 = vst [vmem:[%s5508_s5 + $0x70] sm:$0xff] %v3151_v0  ;;  %v3152_v17 = vadd.f32 %v4267_v36, %v5504_v56 }
 0x219   : > { %3185 = vst [vmem:[%s5508_s5 + $0x60] sm:$0xff] %v3149_v39  ;;  %v3150_v41 = vadd.f32 %v4268_v13, %v5504_v56 }
 0x21a   : > { %3188 = vst [vmem:[%s5508_s5 + $0x78] sm:$0xff] %v3152_v17 }
 0x21b   : > { %3186 = vst [vmem:[%s5508_s5 + $0x68] sm:$0xff] %v3150_v41  ;;  %v4219_v43 = vpop.f32.mrb[16].mxu0 }
 0x21c   : > { %v3015_v44 = vpop.f32.mrb[17].mxu0 }
 0x21d   : > { %v4220_v35 = vpop.f32.mrb[18].mxu0 }
 0x21e   : > { %v3018_v18 = vpop.f32.mrb[19].mxu0 }
 0x222   : > { %v4011_v45 = vpop.f32.mrb[16].mxu1 }
 0x223   : > { %v4269_v37 = vadd.f32 %v4219_v43, %v4011_v45  ;;  %v4223_v47 = vpop.f32.mrb[20].mxu0  ;;  %v1687_v23 = vpop.f32.mrb[17].mxu1 }
 0x224   : > { %v4270_v48 = vadd.f32 %v3015_v44, %v1687_v23  ;;  %v3031_v51 = vpop.f32.mrb[21].mxu0  ;;  %v4012_v49 = vpop.f32.mrb[18].mxu1 }
 0x225   : > { %v3155_v21 = vadd.f32 %v4269_v37, %v5504_v56  ;;  %v4271_v61 = vadd.f32 %v4220_v35, %v4012_v49  ;;  %v4224_v46 = vpop.f32.mrb[22].mxu0  ;;  %v1690_v54 = vpop.f32.mrb[19].mxu1 }
 0x226   : > { %v3153_v32 = vadd.f32 %v4270_v48, %v5504_v56  ;;  %v4272_v58 = vadd.f32 %v3018_v18, %v1690_v54  ;;  %v3034_v59 = vpop.f32.mrb[23].mxu0 }
 0x227   : > { %3191 = vst [vmem:[%s5508_s5 + $0x90] sm:$0xff] %v3155_v21  ;;  %v3156_v6 = vadd.f32 %v4271_v61, %v5504_v56 }
 0x228   : > { %3189 = vst [vmem:[%s5508_s5 + $0x80] sm:$0xff] %v3153_v32  ;;  %v3154_v63 = vadd.f32 %v4272_v58, %v5504_v56 }
 0x229   : > { %3192 = vst [vmem:[%s5508_s5 + $0x98] sm:$0xff] %v3156_v6 }
 0x22a   : > { %3190 = vst [vmem:[%s5508_s5 + $0x88] sm:$0xff] %v3154_v63  ;;  %v4015_v11 = vpop.f32.mrb[20].mxu1 }
 0x22b   : > { %v4273_v60 = vadd.f32 %v4223_v47, %v4015_v11  ;;  %v4227_v8 = vpop.f32.mrb[24].mxu0  ;;  %v1703_v62 = vpop.f32.mrb[21].mxu1 }
 0x22c   : > { %v4274_v42 = vadd.f32 %v3031_v51, %v1703_v62  ;;  %v3047_v53 = vpop.f32.mrb[25].mxu0  ;;  %v4016_v2 = vpop.f32.mrb[22].mxu1 }
 0x22d   : > { %v3159_v1 = vadd.f32 %v4273_v60, %v5504_v56  ;;  %v4275_v25 = vadd.f32 %v4224_v46, %v4016_v2  ;;  %v4228_v3 = vpop.f32.mrb[26].mxu0  ;;  %v1706_v4 = vpop.f32.mrb[23].mxu1 }
 0x22e   : > { %v3157_v16 = vadd.f32 %v4274_v42, %v5504_v56  ;;  %v4276_v22 = vadd.f32 %v3034_v59, %v1706_v4  ;;  %v3050_v5 = vpop.f32.mrb[27].mxu0 }
 0x22f   : > { %3195 = vst [vmem:[%s5508_s5 + $0xb0] sm:$0xff] %v3159_v1  ;;  %v3160_v10 = vadd.f32 %v4275_v25, %v5504_v56 }
 0x230   : > { %3193 = vst [vmem:[%s5508_s5 + $0xa0] sm:$0xff] %v3157_v16  ;;  %v3158_v27 = vadd.f32 %v4276_v22, %v5504_v56 }
 0x231   : > { %3196 = vst [vmem:[%s5508_s5 + $0xb8] sm:$0xff] %v3160_v10 }
 0x232   : > { %3194 = vst [vmem:[%s5508_s5 + $0xa8] sm:$0xff] %v3158_v27  ;;  %v4019_v12 = vpop.f32.mrb[24].mxu1 }
 0x233   : > { %v4277_v40 = vadd.f32 %v4227_v8, %v4019_v12  ;;  %v4231_v14 = vpop.f32.mrb[28].mxu0  ;;  %v1719_v24 = vpop.f32.mrb[25].mxu1 }
 0x234   : > { %v4278_v33 = vadd.f32 %v3047_v53, %v1719_v24  ;;  %v3063_v15 = vpop.f32.mrb[29].mxu0  ;;  %v4020_v55 = vpop.f32.mrb[26].mxu1 }
 0x235   : > { %v3163_v19 = vadd.f32 %v4277_v40, %v5504_v56  ;;  %v4279_v20 = vadd.f32 %v4228_v3, %v4020_v55  ;;  %v4232_v57 = vpop.f32.mrb[30].mxu0  ;;  %v1722_v7 = vpop.f32.mrb[27].mxu1 }
 0x236   : > { %v3161_v38 = vadd.f32 %v4278_v33, %v5504_v56  ;;  %v4280_v50 = vadd.f32 %v3050_v5, %v1722_v7  ;;  %v3066_v26 = vpop.f32.mrb[31].mxu0 }
 0x237   : > { %3199 = vst [vmem:[%s5508_s5 + $0xd0] sm:$0xff] %v3163_v19  ;;  %v3164_v28 = vadd.f32 %v4279_v20, %v5504_v56 }
 0x238   : > { %3197 = vst [vmem:[%s5508_s5 + $0xc0] sm:$0xff] %v3161_v38  ;;  %v3162_v29 = vadd.f32 %v4280_v50, %v5504_v56 }
 0x239   : > { %3200 = vst [vmem:[%s5508_s5 + $0xd8] sm:$0xff] %v3164_v28 }
 0x23a   : > { %3198 = vst [vmem:[%s5508_s5 + $0xc8] sm:$0xff] %v3162_v29  ;;  %v4023_v30 = vpop.f32.mrb[28].mxu1 }
 0x23b   : > { %v4281_v31 = vadd.f32 %v4231_v14, %v4023_v30  ;;  %v4235_v52 = vpop.f32.mrb[32].mxu0  ;;  %v1735_v34 = vpop.f32.mrb[29].mxu1 }
 0x23c   : > { %v4282_v0 = vadd.f32 %v3063_v15, %v1735_v34  ;;  %v3079_v36 = vpop.f32.mrb[33].mxu0  ;;  %v4024_v9 = vpop.f32.mrb[30].mxu1 }
 0x23d   : > { %v3167_v39 = vadd.f32 %v4281_v31, %v5504_v56  ;;  %v4283_v13 = vadd.f32 %v4232_v57, %v4024_v9  ;;  %v4236_v17 = vpop.f32.mrb[34].mxu0  ;;  %v1738_v41 = vpop.f32.mrb[31].mxu1 }
 0x23e   : > { %v3165_v43 = vadd.f32 %v4282_v0, %v5504_v56  ;;  %v4284_v44 = vadd.f32 %v3066_v26, %v1738_v41  ;;  %v3082_v35 = vpop.f32.mrb[35].mxu0 }
 0x23f   : > { %3203 = vst [vmem:[%s5508_s5 + $0xf0] sm:$0xff] %v3167_v39  ;;  %v3168_v18 = vadd.f32 %v4283_v13, %v5504_v56 }
 0x240   : > { %3201 = vst [vmem:[%s5508_s5 + $0xe0] sm:$0xff] %v3165_v43  ;;  %v3166_v45 = vadd.f32 %v4284_v44, %v5504_v56 }
 0x241   : > { %3204 = vst [vmem:[%s5508_s5 + $0xf8] sm:$0xff] %v3168_v18 }
 0x242   : > { %3202 = vst [vmem:[%s5508_s5 + $0xe8] sm:$0xff] %v3166_v45  ;;  %v4027_v37 = vpop.f32.mrb[32].mxu1 }
 0x243   : > { %v4285_v47 = vadd.f32 %v4235_v52, %v4027_v37  ;;  %v1751_v23 = vpop.f32.mrb[33].mxu1 }
 0x244   : > { %v4286_v48 = vadd.f32 %v3079_v36, %v1751_v23  ;;  %v4028_v51 = vpop.f32.mrb[34].mxu1 }
 0x245   : > { %v3171_v49 = vadd.f32 %v4285_v47, %v5504_v56  ;;  %v4287_v21 = vadd.f32 %v4236_v17, %v4028_v51  ;;  %v1754_v61 = vpop.f32.mrb[35].mxu1 }
 0x246   : > { %v3169_v46 = vadd.f32 %v4286_v48, %v5504_v56  ;;  %v4288_v54 = vadd.f32 %v3082_v35, %v1754_v61 }
 0x247   : > { %3207 = vst [vmem:[%s5508_s5 + $0x110] sm:$0xff] %v3171_v49  ;;  %v3172_v32 = vadd.f32 %v4287_v21, %v5504_v56 }
 0x248   : > { %3205 = vst [vmem:[%s5508_s5 + $0x100] sm:$0xff] %v3169_v46  ;;  %v3170_v58 = vadd.f32 %v4288_v54, %v5504_v56 }
 0x249   : > { %3208 = vst [vmem:[%s5508_s5 + $0x118] sm:$0xff] %v3172_v32 }
 0x24a   : > { %3206 = vst [vmem:[%s5508_s5 + $0x108] sm:$0xff] %v3170_v58 }
 0x24b   : > { %4694 = shalt.err (!%p4691_p5)
}
 0x24c   : > { %s4695_s26 = scalar_lea.hbm %s5581_s15, 4608  ;;  %s4699_s6 = scalar_lea.hbm %s5640_s3, 9216 }
 0x24d   : > { %p4696_p6 = scmp.ne.s32.totalorder %s5581_s15, %s4695_s26  ;;  %p4700_p10 = scmp.lt.u32.totalorder %s5581_s15, %s5640_s3 }
 0x24e   : > { %p4701_p11 = scmp.lt.u32.totalorder %s4699_s6, %s4695_s26  ;;  %p4703_p13 = scmp.lt.u32.totalorder %s4695_s26, %s5581_s15 }
 0x24f   : > { %p4697_p7 = pnand %p4696_p6, %p4824_p4 }
 0x250   : > { %p4702_p12 = por %p4701_p11, %p4700_p10 }
 0x251   : > { %p4698_p9 = pneg %p4697_p7 }
 0x252   : > { %p4704_p0 = por %p4703_p13, %p4702_p12 }
 0x254   : > { %p4705_p1 = pnand %p4704_p0, %p4698_p9 }
 0x256   : > { %4708 = shalt.err (!%p4705_p1)
}
 0x257   : > { %s4762_s4 = smov 128   ;;  %s4763_s5 = smov 8  }
 0x258   : > { %4544 = dma.vmem_to_hbm [thread:$0]  (%p4824_p4), %s5583_s8, 4608, %s5581_s15, %s5591_s11, %s4762_s4, %s4762_s4, %s4763_s5  }
 0x259 PF: > { %p4550_p2 = scmp.ge.s32.totalorder %s4759_s17, 2  ;;  %s3239_s7 = sand.u32 1, %s4739_s12  }
 0x25a   : > { %s3240_s9 = scalar_lea.sflag [#allocation3], %s3239_s7 }
 0x25b   : > { %p4547_p3 = pnand %p4550_p2, %p4831_p8 }
 0x25d   : > { %4734 = dma.done.wait (!%p4547_p3), %s3240_s9, 4608  }
 0x25e   : > { %4736 = vsyncadd (!%p4547_p3), %s3240_s9, 4294962688  ;;  %s16_s17 = sadd.s32 1, %s4759_s17   ;;  %s5643_s12 = smov %s4743_s13 }
 0x25f   : > { %p13_p5 = scmp.ge.s32.totalorder %s16_s17, 4   ;;  %s5644_s13 = smov %s4747_s14 }
 0x260   : > { %s5645_s14 = smov %s4837_s25  ;;  %s5646_s15 = smov %s4755_s16 }
 0x261   : > { %s5647_s16 = smov %s5649_s20  ;;  %15 = sbr.rel (!%p13_p5) target bundleno = 4 (0x4), region = 81 }
 0x268   :  { %3245 = vsyncpa [#allocation3], 1 }
 0x269   :  { %3247 = vsyncpa [#allocation3 + $0x1], 1 }

</bundles_post_ra>
